<compile_context>
chip_gen: v7x
topology: tpu7x:2x2x1
jax: 0.10.0
libtpu: 0.0.40
codegen_flags: <defaults>
</compile_context>

<pallas_src>
import math
from functools import partial

import jax
import jax.numpy as jnp
from jax.experimental import pallas as pl
from jax.experimental.pallas import tpu as pltpu


def _round_up(v, m):
    return ((v + m - 1) // m) * m


def _cdiv(a, b):
    return (a + b - 1) // b


# ---------------------------------------------------------------------------
# In-kernel math helpers (float32)
# ---------------------------------------------------------------------------
def _erf_f32(x):
    """float32 erf via the rational approximation XLA uses (ErfImpl32).

    The final divide is routed through pl.reciprocal so it lands on the EUP
    slot instead of the long-latency VALU divide path.
    """
    alpha = (0.00022905065861350646, 0.0034082910107109506,
             0.050955695062380861, 0.18520832239976145, 1.128379143519084)
    beta = (-1.1791602954361697e-7, 0.000023547966471313185,
            0.0010179625278914885, 0.014070470171167667,
            0.11098505178285362, 0.49746925110067538, 1.0)
    lim = 3.832506856900711  # erfinv(1 - 2^-23)
    x = jnp.clip(x, -lim, lim)
    x2 = x * x
    p = jnp.full_like(x2, alpha[0])
    for c in alpha[1:]:
        p = p * x2 + c
    q = jnp.full_like(x2, beta[0])
    for c in beta[1:]:
        q = q * x2 + c
    return (x * p) * pl.reciprocal(q, approx=False)


def _gelu_exact(x):
    # Matches torch.nn.GELU() default (erf-based, not tanh approximation).
    # TODO(synk): on v5e a tanh-approx GELU (EUP) would free VALU bundles, but
    # exact erf is kept for parity with the torch reference.
    return 0.5 * x * (1.0 + _erf_f32(x * (1.0 / math.sqrt(2.0))))


# ---------------------------------------------------------------------------
# Fused ProjectionHead kernel
#   grid = (row_tiles, col_tiles_of_last_layer)
# ---------------------------------------------------------------------------
def _projection_head_kernel(x_ref, w1, b1, w2, b2, w3, b3, w4, b4, o_ref,
                            h_norm, *, compute_dtype):
    cd = compute_dtype

    # The first three Linear+GELU layers and the L2 normalize depend only on
    # the row tile: compute them once per row tile (at the first column step)
    # and keep the normalized activations in a persistent VMEM scratch.
    @pl.when(pl.program_id(1) == 0)
    def _():
        x = x_ref[...].astype(cd)
        h = jnp.dot(x, w1[...], preferred_element_type=jnp.float32) + b1[...]
        h = _gelu_exact(h)
        h = jnp.dot(h.astype(cd), w2[...],
                    preferred_element_type=jnp.float32) + b2[...]
        h = _gelu_exact(h)
        h = jnp.dot(h.astype(cd), w3[...],
                    preferred_element_type=jnp.float32) + b3[...]
        # F.normalize(p=2, dim=-1, eps=1e-12)  ==  x / max(||x||_2, 1e-12)
        ss = jnp.sum(h * h, axis=-1, keepdims=True)
        h = h * jax.lax.rsqrt(jnp.maximum(ss, 1e-24))      # rsqrt -> EUP slot
        h_norm[...] = h.astype(h_norm.dtype)

    y = jnp.dot(h_norm[...], w4[...],
                preferred_element_type=jnp.float32) + b4[...]
    o_ref[...] = y.astype(o_ref.dtype)


# ---------------------------------------------------------------------------
# Wrapper
# ---------------------------------------------------------------------------
def _vmem_capacity_bytes():
    try:
        return int(pltpu.get_tpu_info().vmem_capacity_bytes)
    except Exception:
        return 64 << 20          # conservative: v7x per-TensorCore VMEM


def projection_head_forward(x, params, *, block_rows=None, block_cols=8192,
                            use_bf16_matmul=True, single_buffer_weights=True):
    """x: (..., in_dim).  params: ((w1,b1),(w2,b2),(w3,b3),(w4,b4)), weights
    stored transposed (in_features, out_features), biases (1, out_features)."""
    *lead, in_dim = x.shape
    n = 1
    for d in lead:
        n *= d

    (w1, b1), (w2, b2), (w3, b3), (w4, b4) = params
    hidden_dim = w1.shape[1]
    bottleneck_dim = w3.shape[1]
    out_dim = w4.shape[1]
    out_dtype = x.dtype

    compute_dtype = jnp.bfloat16 if use_bf16_matmul else jnp.float32

    # Pre-cast weights + activation input ONCE in the wrapper (not per grid
    # step in the kernel).  Biases stay f32 and are added to the f32
    # accumulator.
    w1c, w2c, w3c, w4c = (w.astype(compute_dtype) for w in (w1, w2, w3, w4))
    b1c, b2c, b3c, b4c = (jnp.asarray(b, jnp.float32).reshape(1, -1)
                          for b in (b1, b2, b3, b4))
    x2 = x.reshape(n, in_dim).astype(compute_dtype)

    vmem_cap = _vmem_capacity_bytes()

    # Row tile: bigger on 128 MiB parts (v5e/v6e), 256 on v7x (64 MiB VMEM).
    if block_rows is None:
        block_rows = 512 if vmem_cap >= (96 << 20) else 256

    # Guarantee >= 2 row steps whenever possible so v7x's two TensorCores both
    # get work under dimension_semantics=("parallel", ...).
    if n <= 8:
        bt = n
    elif n <= 2 * block_rows:
        bt = _round_up(_cdiv(n, 2), 8)
    else:
        bt = block_rows
    num_row = _cdiv(n, bt)

    # Column tiling of the last (possibly very wide) layer: W4 never has to be
    # fully VMEM resident.  Lane-dense tiles (multiples of 128).
    tn = out_dim if out_dim <= block_cols else block_cols
    num_col = _cdiv(out_dim, tn)

    x_spec = pl.BlockSpec((bt, in_dim), lambda i, j: (i, 0))
    out_spec = pl.BlockSpec((bt, tn), lambda i, j: (i, j))

    def _const_spec(p):
        # Constant index_map => DMA'd once, VMEM-resident across all steps.
        if single_buffer_weights:
            return pl.BlockSpec(p.shape, lambda i, j: (0, 0),
                                pipeline_mode=pl.Buffered(1))
        return pl.BlockSpec(p.shape, lambda i, j: (0, 0))

    if num_col == 1:
        w4_spec = _const_spec(w4c)
        b4_spec = _const_spec(b4c)
    else:
        w4_spec = pl.BlockSpec((bottleneck_dim, tn), lambda i, j: (0, j))
        b4_spec = pl.BlockSpec((1, tn), lambda i, j: (0, j))

    # --- scoped-VMEM budget (advisory; generation-aware, with headroom) -----
    resident = (w1c, b1c, w2c, b2c, w3c, b3c)
    res_bytes = sum(int(p.size) * p.dtype.itemsize for p in resident)
    res_bytes *= 1 if single_buffer_weights else 2
    w4_tile_bytes = bottleneck_dim * tn * w4c.dtype.itemsize + tn * 4
    w4_tile_bytes *= 1 if (num_col == 1 and single_buffer_weights) else 2
    act_bytes = 2 * bt * in_dim * x2.dtype.itemsize + 2 * bt * tn * 4
    scratch_bytes = bt * bottleneck_dim * jnp.dtype(compute_dtype).itemsize
    max_feat = max(in_dim, hidden_dim, bottleneck_dim, tn)
    inter_bytes = 6 * 4 * bt * max_feat            # f32 intermediates headroom
    budget = (res_bytes + w4_tile_bytes + act_bytes + scratch_bytes
              + inter_bytes + (4 << 20))
    vmem_limit = int(min(max(budget, 32 << 20), vmem_cap - (12 << 20)))

    y = pl.pallas_call(
        partial(_projection_head_kernel, compute_dtype=compute_dtype),
        out_shape=jax.ShapeDtypeStruct((n, out_dim), out_dtype),
        grid=(num_row, num_col),
        in_specs=[x_spec,
                  _const_spec(w1c), _const_spec(b1c),
                  _const_spec(w2c), _const_spec(b2c),
                  _const_spec(w3c), _const_spec(b3c),
                  w4_spec, b4_spec],
        out_specs=out_spec,
        scratch_shapes=[pltpu.VMEM((bt, bottleneck_dim), compute_dtype)],
        compiler_params=pltpu.CompilerParams(
            dimension_semantics=("parallel", "arbitrary"),
            vmem_limit_bytes=vmem_limit),
    )(x2, w1c, b1c, w2c, b2c, w3c, b3c, w4c, b4c)

    return y.reshape(*lead, out_dim)


# ---------------------------------------------------------------------------
# Deterministic parameter init (mirrors torch.nn.Linear default init; weights
# stored transposed so the kernel computes y = x @ W + b)
# ---------------------------------------------------------------------------
def init_params(key, in_dim, out_dim, hidden_dim, bottleneck_dim):
    dims = [(in_dim, hidden_dim), (hidden_dim, hidden_dim),
            (hidden_dim, bottleneck_dim), (bottleneck_dim, out_dim)]
    params = []
    for i, (fi, fo) in enumerate(dims):
        kw, kb = jax.random.split(jax.random.fold_in(key, i))
        bound = 1.0 / math.sqrt(fi)
        w = jax.random.uniform(kw, (fi, fo), jnp.float32, -bound, bound)
        b = jax.random.uniform(kb, (1, fo), jnp.float32, -bound, bound)
        params.append((w, b))
    return tuple(params)


# ---------------------------------------------------------------------------
# Pure-JAX reference (correctness check)
# ---------------------------------------------------------------------------
def _reference(x, params):
    (w1, b1), (w2, b2), (w3, b3), (w4, b4) = params
    hp = jax.lax.Precision.HIGHEST
    inv_sqrt2 = 1.0 / math.sqrt(2.0)
    h = jnp.dot(x, w1, precision=hp) + b1
    h = 0.5 * h * (1.0 + jax.lax.erf(h * inv_sqrt2))
    h = jnp.dot(h, w2, precision=hp) + b2
    h = 0.5 * h * (1.0 + jax.lax.erf(h * inv_sqrt2))
    h = jnp.dot(h, w3, precision=hp) + b3
    nrm = jnp.sqrt(jnp.sum(h * h, axis=-1, keepdims=True))
    h = h / jnp.maximum(nrm, 1e-12)
    return jnp.dot(h, w4, precision=hp) + b4


# ---------------------------------------------------------------------------
if __name__ == "__main__":
    # Small but lane-dense shapes (feature dims multiples of 128).
    lead = (2, 8)   # 16 flattened rows -> two row tiles of 8 (both v7x TCs busy)
    in_dim, hidden_dim, bottleneck_dim, out_dim = 128, 256, 128, 128

    key = jax.random.PRNGKey(0)
    kx, kp = jax.random.split(key)
    x = jax.random.normal(kx, (*lead, in_dim), jnp.float32)
    params = init_params(kp, in_dim, out_dim, hidden_dim, bottleneck_dim)

    def run(**kw):
        out = projection_head_forward(x, params, **kw)
        jax.block_until_ready(out)
        return out

    sbw = True
    try:
        out_bf16 = run(single_buffer_weights=True)      # default: bf16 MXU operands
    except Exception:
        # Fallback if pl.Buffered(1) single-buffering is rejected by this jax
        # version; default double-buffered weight specs are still correct.
        sbw = False
        out_bf16 = run(single_buffer_weights=False)

    out_f32 = run(use_bf16_matmul=False, single_buffer_weights=sbw)

    assert out_bf16.shape == (*lead, out_dim) and out_bf16.dtype == jnp.float32

    ref = _reference(x, params)
    err_f32 = float(jnp.max(jnp.abs(out_f32 - ref)))
    err_b16 = float(jnp.max(jnp.abs(out_bf16 - ref)))
    # fp32-operand mode: tight parity with the torch/fp32 reference.
    assert jnp.allclose(out_f32, ref, atol=1e-3, rtol=1e-3), ("f32 err", err_f32)
    # bf16-operand mode (default): small operand-rounding error, f32 accumulate.
    assert jnp.allclose(out_bf16, ref, atol=5e-2, rtol=5e-2), ("bf16 err", err_b16)

    print("KERNEL_OK")
</pallas_src>

<mosaic_0001>
module attributes {stable_mosaic.version = 11 : i64} {
  func.func @_projection_head_kernel(%arg0: i32, %arg1: i32, %arg2: memref<8x128xbf16, #tpu.memory_space<vmem>>, %arg3: memref<128x256xbf16, #tpu.memory_space<vmem>>, %arg4: memref<1x256xf32, #tpu.memory_space<vmem>>, %arg5: memref<256x256xbf16, #tpu.memory_space<vmem>>, %arg6: memref<1x256xf32, #tpu.memory_space<vmem>>, %arg7: memref<256x128xbf16, #tpu.memory_space<vmem>>, %arg8: memref<1x128xf32, #tpu.memory_space<vmem>>, %arg9: memref<128x128xbf16, #tpu.memory_space<vmem>>, %arg10: memref<1x128xf32, #tpu.memory_space<vmem>>, %arg11: memref<8x128xf32, #tpu.memory_space<vmem>>, %arg12: memref<8x128xbf16, #tpu.memory_space<vmem>>) attributes {dimension_semantics = [#tpu.dimension_semantics<parallel>, #tpu.dimension_semantics<arbitrary>], iteration_bounds = array<i64: 2, 1>, scalar_prefetch = 0 : i64, scratch_operands = 1 : i64, tpu.core_type = #tpu.core_type<tc>, window_params = [{transform_indices = @transform_0, window_bounds = array<i64: 8, 128>}, {pipeline_mode = #tpu.pipeline_mode<synchronous>, transform_indices = @transform_1, window_bounds = array<i64: 128, 256>}, {pipeline_mode = #tpu.pipeline_mode<synchronous>, transform_indices = @transform_2, window_bounds = array<i64: 1, 256>}, {pipeline_mode = #tpu.pipeline_mode<synchronous>, transform_indices = @transform_3, window_bounds = array<i64: 256, 256>}, {pipeline_mode = #tpu.pipeline_mode<synchronous>, transform_indices = @transform_4, window_bounds = array<i64: 1, 256>}, {pipeline_mode = #tpu.pipeline_mode<synchronous>, transform_indices = @transform_5, window_bounds = array<i64: 256, 128>}, {pipeline_mode = #tpu.pipeline_mode<synchronous>, transform_indices = @transform_6, window_bounds = array<i64: 1, 128>}, {pipeline_mode = #tpu.pipeline_mode<synchronous>, transform_indices = @transform_7, window_bounds = array<i64: 128, 128>}, {pipeline_mode = #tpu.pipeline_mode<synchronous>, transform_indices = @transform_8, window_bounds = array<i64: 1, 128>}, {transform_indices = @transform_9, window_bounds = array<i64: 8, 128>}]} {
    %c0_i32 = arith.constant 0 : i32
    %0 = arith.cmpi eq, %arg1, %c0_i32 : i32
    %1 = arith.extui %0 : i1 to i32
    %c0_i32_0 = arith.constant 0 : i32
    %2 = arith.cmpi ne, %1, %c0_i32_0 : i32
    scf.if %2 {
      %c0_8 = arith.constant 0 : index
      %c0_9 = arith.constant 0 : index
      %10 = vector.load %arg2[%c0_8, %c0_9] : memref<8x128xbf16, #tpu.memory_space<vmem>>, vector<8x128xbf16>
      %c0_10 = arith.constant 0 : index
      %c0_11 = arith.constant 0 : index
      %11 = vector.load %arg3[%c0_10, %c0_11] : memref<128x256xbf16, #tpu.memory_space<vmem>>, vector<128x256xbf16>
      %cst_12 = arith.constant dense<0.000000e+00> : vector<8x256xf32>
      %12 = tpu.matmul %10, %11, %cst_12 {dimension_numbers = #tpu.dot_dimension_numbers<[1], [0], [0], [1], [0, 0, 1, 1], [], []>} : vector<8x128xbf16>, vector<128x256xbf16>, vector<8x256xf32> -> vector<8x256xf32>
      %c0_13 = arith.constant 0 : index
      %c0_14 = arith.constant 0 : index
      %13 = vector.load %arg4[%c0_13, %c0_14] : memref<1x256xf32, #tpu.memory_space<vmem>>, vector<1x256xf32>
      %14 = vector.broadcast %13 : vector<1x256xf32> to vector<8x256xf32>
      %15 = arith.addf %12, %14 : vector<8x256xf32>
      %cst_15 = arith.constant 5.000000e-01 : f32
      %16 = vector.broadcast %cst_15 : f32 to vector<8x256xf32>
      %17 = arith.mulf %16, %15 : vector<8x256xf32>
      %cst_16 = arith.constant 0.707106769 : f32
      %18 = vector.broadcast %cst_16 : f32 to vector<8x256xf32>
      %19 = arith.mulf %15, %18 : vector<8x256xf32>
      %cst_17 = arith.constant -3.8325069 : f32
      %cst_18 = arith.constant 3.8325069 : f32
      %20 = vector.broadcast %cst_17 : f32 to vector<8x256xf32>
      %21 = arith.maximumf %20, %19 : vector<8x256xf32>
      %22 = vector.broadcast %cst_18 : f32 to vector<8x256xf32>
      %23 = arith.minimumf %22, %21 : vector<8x256xf32>
      %24 = arith.mulf %23, %23 : vector<8x256xf32>
      %cst_19 = arith.constant 2.29050653E-4 : f32
      %25 = vector.broadcast %cst_19 : f32 to vector<8x256xf32>
      %26 = arith.mulf %25, %24 : vector<8x256xf32>
      %cst_20 = arith.constant 0.00340829091 : f32
      %27 = vector.broadcast %cst_20 : f32 to vector<8x256xf32>
      %28 = arith.addf %26, %27 : vector<8x256xf32>
      %29 = arith.mulf %28, %24 : vector<8x256xf32>
      %cst_21 = arith.constant 0.0509556942 : f32
      %30 = vector.broadcast %cst_21 : f32 to vector<8x256xf32>
      %31 = arith.addf %29, %30 : vector<8x256xf32>
      %32 = arith.mulf %31, %24 : vector<8x256xf32>
      %cst_22 = arith.constant 0.185208321 : f32
      %33 = vector.broadcast %cst_22 : f32 to vector<8x256xf32>
      %34 = arith.addf %32, %33 : vector<8x256xf32>
      %35 = arith.mulf %34, %24 : vector<8x256xf32>
      %cst_23 = arith.constant 1.12837911 : f32
      %36 = vector.broadcast %cst_23 : f32 to vector<8x256xf32>
      %37 = arith.addf %35, %36 : vector<8x256xf32>
      %cst_24 = arith.constant -1.17916031E-7 : f32
      %38 = vector.broadcast %cst_24 : f32 to vector<8x256xf32>
      %39 = arith.mulf %38, %24 : vector<8x256xf32>
      %cst_25 = arith.constant 2.35479656E-5 : f32
      %40 = vector.broadcast %cst_25 : f32 to vector<8x256xf32>
      %41 = arith.addf %39, %40 : vector<8x256xf32>
      %42 = arith.mulf %41, %24 : vector<8x256xf32>
      %cst_26 = arith.constant 0.00101796258 : f32
      %43 = vector.broadcast %cst_26 : f32 to vector<8x256xf32>
      %44 = arith.addf %42, %43 : vector<8x256xf32>
      %45 = arith.mulf %44, %24 : vector<8x256xf32>
      %cst_27 = arith.constant 0.0140704699 : f32
      %46 = vector.broadcast %cst_27 : f32 to vector<8x256xf32>
      %47 = arith.addf %45, %46 : vector<8x256xf32>
      %48 = arith.mulf %47, %24 : vector<8x256xf32>
      %cst_28 = arith.constant 0.110985048 : f32
      %49 = vector.broadcast %cst_28 : f32 to vector<8x256xf32>
      %50 = arith.addf %48, %49 : vector<8x256xf32>
      %51 = arith.mulf %50, %24 : vector<8x256xf32>
      %cst_29 = arith.constant 0.497469246 : f32
      %52 = vector.broadcast %cst_29 : f32 to vector<8x256xf32>
      %53 = arith.addf %51, %52 : vector<8x256xf32>
      %54 = arith.mulf %53, %24 : vector<8x256xf32>
      %cst_30 = arith.constant 1.000000e+00 : f32
      %55 = vector.broadcast %cst_30 : f32 to vector<8x256xf32>
      %56 = arith.addf %54, %55 : vector<8x256xf32>
      %57 = arith.mulf %23, %37 : vector<8x256xf32>
      %58 = tpu.reciprocal %56 : vector<8x256xf32> -> vector<8x256xf32>
      %59 = arith.mulf %57, %58 : vector<8x256xf32>
      %cst_31 = arith.constant 1.000000e+00 : f32
      %60 = vector.broadcast %cst_31 : f32 to vector<8x256xf32>
      %61 = arith.addf %60, %59 : vector<8x256xf32>
      %62 = arith.mulf %17, %61 : vector<8x256xf32>
      %63 = arith.truncf %62 : vector<8x256xf32> to vector<8x256xbf16>
      %c0_32 = arith.constant 0 : index
      %c0_33 = arith.constant 0 : index
      %64 = vector.load %arg5[%c0_32, %c0_33] : memref<256x256xbf16, #tpu.memory_space<vmem>>, vector<256x256xbf16>
      %cst_34 = arith.constant dense<0.000000e+00> : vector<8x256xf32>
      %65 = tpu.matmul %63, %64, %cst_34 {dimension_numbers = #tpu.dot_dimension_numbers<[1], [0], [0], [1], [0, 0, 1, 1], [], []>} : vector<8x256xbf16>, vector<256x256xbf16>, vector<8x256xf32> -> vector<8x256xf32>
      %c0_35 = arith.constant 0 : index
      %c0_36 = arith.constant 0 : index
      %66 = vector.load %arg6[%c0_35, %c0_36] : memref<1x256xf32, #tpu.memory_space<vmem>>, vector<1x256xf32>
      %67 = vector.broadcast %66 : vector<1x256xf32> to vector<8x256xf32>
      %68 = arith.addf %65, %67 : vector<8x256xf32>
      %cst_37 = arith.constant 5.000000e-01 : f32
      %69 = vector.broadcast %cst_37 : f32 to vector<8x256xf32>
      %70 = arith.mulf %69, %68 : vector<8x256xf32>
      %cst_38 = arith.constant 0.707106769 : f32
      %71 = vector.broadcast %cst_38 : f32 to vector<8x256xf32>
      %72 = arith.mulf %68, %71 : vector<8x256xf32>
      %cst_39 = arith.constant -3.8325069 : f32
      %cst_40 = arith.constant 3.8325069 : f32
      %73 = vector.broadcast %cst_39 : f32 to vector<8x256xf32>
      %74 = arith.maximumf %73, %72 : vector<8x256xf32>
      %75 = vector.broadcast %cst_40 : f32 to vector<8x256xf32>
      %76 = arith.minimumf %75, %74 : vector<8x256xf32>
      %77 = arith.mulf %76, %76 : vector<8x256xf32>
      %cst_41 = arith.constant 2.29050653E-4 : f32
      %78 = vector.broadcast %cst_41 : f32 to vector<8x256xf32>
      %79 = arith.mulf %78, %77 : vector<8x256xf32>
      %cst_42 = arith.constant 0.00340829091 : f32
      %80 = vector.broadcast %cst_42 : f32 to vector<8x256xf32>
      %81 = arith.addf %79, %80 : vector<8x256xf32>
      %82 = arith.mulf %81, %77 : vector<8x256xf32>
      %cst_43 = arith.constant 0.0509556942 : f32
      %83 = vector.broadcast %cst_43 : f32 to vector<8x256xf32>
      %84 = arith.addf %82, %83 : vector<8x256xf32>
      %85 = arith.mulf %84, %77 : vector<8x256xf32>
      %cst_44 = arith.constant 0.185208321 : f32
      %86 = vector.broadcast %cst_44 : f32 to vector<8x256xf32>
      %87 = arith.addf %85, %86 : vector<8x256xf32>
      %88 = arith.mulf %87, %77 : vector<8x256xf32>
      %cst_45 = arith.constant 1.12837911 : f32
      %89 = vector.broadcast %cst_45 : f32 to vector<8x256xf32>
      %90 = arith.addf %88, %89 : vector<8x256xf32>
      %cst_46 = arith.constant -1.17916031E-7 : f32
      %91 = vector.broadcast %cst_46 : f32 to vector<8x256xf32>
      %92 = arith.mulf %91, %77 : vector<8x256xf32>
      %cst_47 = arith.constant 2.35479656E-5 : f32
      %93 = vector.broadcast %cst_47 : f32 to vector<8x256xf32>
      %94 = arith.addf %92, %93 : vector<8x256xf32>
      %95 = arith.mulf %94, %77 : vector<8x256xf32>
      %cst_48 = arith.constant 0.00101796258 : f32
      %96 = vector.broadcast %cst_48 : f32 to vector<8x256xf32>
      %97 = arith.addf %95, %96 : vector<8x256xf32>
      %98 = arith.mulf %97, %77 : vector<8x256xf32>
      %cst_49 = arith.constant 0.0140704699 : f32
      %99 = vector.broadcast %cst_49 : f32 to vector<8x256xf32>
      %100 = arith.addf %98, %99 : vector<8x256xf32>
      %101 = arith.mulf %100, %77 : vector<8x256xf32>
      %cst_50 = arith.constant 0.110985048 : f32
      %102 = vector.broadcast %cst_50 : f32 to vector<8x256xf32>
      %103 = arith.addf %101, %102 : vector<8x256xf32>
      %104 = arith.mulf %103, %77 : vector<8x256xf32>
      %cst_51 = arith.constant 0.497469246 : f32
      %105 = vector.broadcast %cst_51 : f32 to vector<8x256xf32>
      %106 = arith.addf %104, %105 : vector<8x256xf32>
      %107 = arith.mulf %106, %77 : vector<8x256xf32>
      %cst_52 = arith.constant 1.000000e+00 : f32
      %108 = vector.broadcast %cst_52 : f32 to vector<8x256xf32>
      %109 = arith.addf %107, %108 : vector<8x256xf32>
      %110 = arith.mulf %76, %90 : vector<8x256xf32>
      %111 = tpu.reciprocal %109 : vector<8x256xf32> -> vector<8x256xf32>
      %112 = arith.mulf %110, %111 : vector<8x256xf32>
      %cst_53 = arith.constant 1.000000e+00 : f32
      %113 = vector.broadcast %cst_53 : f32 to vector<8x256xf32>
      %114 = arith.addf %113, %112 : vector<8x256xf32>
      %115 = arith.mulf %70, %114 : vector<8x256xf32>
      %116 = arith.truncf %115 : vector<8x256xf32> to vector<8x256xbf16>
      %c0_54 = arith.constant 0 : index
      %c0_55 = arith.constant 0 : index
      %117 = vector.load %arg7[%c0_54, %c0_55] : memref<256x128xbf16, #tpu.memory_space<vmem>>, vector<256x128xbf16>
      %cst_56 = arith.constant dense<0.000000e+00> : vector<8x128xf32>
      %118 = tpu.matmul %116, %117, %cst_56 {dimension_numbers = #tpu.dot_dimension_numbers<[1], [0], [0], [1], [0, 0, 1, 1], [], []>} : vector<8x256xbf16>, vector<256x128xbf16>, vector<8x128xf32> -> vector<8x128xf32>
      %c0_57 = arith.constant 0 : index
      %c0_58 = arith.constant 0 : index
      %119 = vector.load %arg8[%c0_57, %c0_58] : memref<1x128xf32, #tpu.memory_space<vmem>>, vector<1x128xf32>
      %120 = vector.broadcast %119 : vector<1x128xf32> to vector<8x128xf32>
      %121 = arith.addf %118, %120 : vector<8x128xf32>
      %122 = arith.mulf %121, %121 : vector<8x128xf32>
      %cst_59 = arith.constant dense<0.000000e+00> : vector<8xf32>
      %123 = vector.multi_reduction <add>, %122, %cst_59 [1] : vector<8x128xf32> to vector<8xf32>
      %124 = vector.shape_cast %123 : vector<8xf32> to vector<8x1xf32>
      %cst_60 = arith.constant 1.000000e-24 : f32
      %125 = vector.broadcast %cst_60 : f32 to vector<8x1xf32>
      %126 = arith.maximumf %124, %125 : vector<8x1xf32>
      %127 = math.rsqrt %126 : vector<8x1xf32>
      %128 = vector.broadcast %127 : vector<8x1xf32> to vector<8x128xf32>
      %129 = arith.mulf %121, %128 : vector<8x128xf32>
      %130 = arith.truncf %129 : vector<8x128xf32> to vector<8x128xbf16>
      %c0_61 = arith.constant 0 : index
      %c0_62 = arith.constant 0 : index
      %131 = vector.load %arg12[%c0_61, %c0_62] : memref<8x128xbf16, #tpu.memory_space<vmem>>, vector<8x128xbf16>
      tpu.vector_store %arg12[%c0_61, %c0_62], %130 {strides = array<i32>} : memref<8x128xbf16, #tpu.memory_space<vmem>>, vector<8x128xbf16>,
    } else {
    }
    %c0 = arith.constant 0 : index
    %c0_1 = arith.constant 0 : index
    %3 = vector.load %arg12[%c0, %c0_1] : memref<8x128xbf16, #tpu.memory_space<vmem>>, vector<8x128xbf16>
    %c0_2 = arith.constant 0 : index
    %c0_3 = arith.constant 0 : index
    %4 = vector.load %arg9[%c0_2, %c0_3] : memref<128x128xbf16, #tpu.memory_space<vmem>>, vector<128x128xbf16>
    %cst = arith.constant dense<0.000000e+00> : vector<8x128xf32>
    %5 = tpu.matmul %3, %4, %cst {dimension_numbers = #tpu.dot_dimension_numbers<[1], [0], [0], [1], [0, 0, 1, 1], [], []>} : vector<8x128xbf16>, vector<128x128xbf16>, vector<8x128xf32> -> vector<8x128xf32>
    %c0_4 = arith.constant 0 : index
    %c0_5 = arith.constant 0 : index
    %6 = vector.load %arg10[%c0_4, %c0_5] : memref<1x128xf32, #tpu.memory_space<vmem>>, vector<1x128xf32>
    %7 = vector.broadcast %6 : vector<1x128xf32> to vector<8x128xf32>
    %8 = arith.addf %5, %7 : vector<8x128xf32>
    %c0_6 = arith.constant 0 : index
    %c0_7 = arith.constant 0 : index
    %9 = vector.load %arg11[%c0_6, %c0_7] : memref<8x128xf32, #tpu.memory_space<vmem>>, vector<8x128xf32>
    tpu.vector_store %arg11[%c0_6, %c0_7], %8 {strides = array<i32>} : memref<8x128xf32, #tpu.memory_space<vmem>>, vector<8x128xf32>,
    return
  }
  func.func @transform_0(%arg0: i32, %arg1: i32) -> (i32, i32) {
    %c0_i32 = arith.constant 0 : i32
    %c0_i32_0 = arith.constant 0 : i32
    return %arg0, %c0_i32 : i32, i32
  }
  func.func @transform_1(%arg0: i32, %arg1: i32) -> (i32, i32) {
    %c0_i32 = arith.constant 0 : i32
    %c0_i32_0 = arith.constant 0 : i32
    %c0_i32_1 = arith.constant 0 : i32
    return %c0_i32, %c0_i32_0 : i32, i32
  }
  func.func @transform_2(%arg0: i32, %arg1: i32) -> (i32, i32) {
    %c0_i32 = arith.constant 0 : i32
    %c0_i32_0 = arith.constant 0 : i32
    %c0_i32_1 = arith.constant 0 : i32
    return %c0_i32, %c0_i32_0 : i32, i32
  }
  func.func @transform_3(%arg0: i32, %arg1: i32) -> (i32, i32) {
    %c0_i32 = arith.constant 0 : i32
    %c0_i32_0 = arith.constant 0 : i32
    %c0_i32_1 = arith.constant 0 : i32
    return %c0_i32, %c0_i32_0 : i32, i32
  }
  func.func @transform_4(%arg0: i32, %arg1: i32) -> (i32, i32) {
    %c0_i32 = arith.constant 0 : i32
    %c0_i32_0 = arith.constant 0 : i32
    %c0_i32_1 = arith.constant 0 : i32
    return %c0_i32, %c0_i32_0 : i32, i32
  }
  func.func @transform_5(%arg0: i32, %arg1: i32) -> (i32, i32) {
    %c0_i32 = arith.constant 0 : i32
    %c0_i32_0 = arith.constant 0 : i32
    %c0_i32_1 = arith.constant 0 : i32
    return %c0_i32, %c0_i32_0 : i32, i32
  }
  func.func @transform_6(%arg0: i32, %arg1: i32) -> (i32, i32) {
    %c0_i32 = arith.constant 0 : i32
    %c0_i32_0 = arith.constant 0 : i32
    %c0_i32_1 = arith.constant 0 : i32
    return %c0_i32, %c0_i32_0 : i32, i32
  }
  func.func @transform_7(%arg0: i32, %arg1: i32) -> (i32, i32) {
    %c0_i32 = arith.constant 0 : i32
    %c0_i32_0 = arith.constant 0 : i32
    %c0_i32_1 = arith.constant 0 : i32
    return %c0_i32, %c0_i32_0 : i32, i32
  }
  func.func @transform_8(%arg0: i32, %arg1: i32) -> (i32, i32) {
    %c0_i32 = arith.constant 0 : i32
    %c0_i32_0 = arith.constant 0 : i32
    %c0_i32_1 = arith.constant 0 : i32
    return %c0_i32, %c0_i32_0 : i32, i32
  }
  func.func @transform_9(%arg0: i32, %arg1: i32) -> (i32, i32) {
    %c0_i32 = arith.constant 0 : i32
    return %arg0, %arg1 : i32, i32
  }
}

module attributes {stable_mosaic.version = 11 : i64} {
  func.func @_projection_head_kernel(%arg0: i32, %arg1: i32, %arg2: memref<8x128xbf16, #tpu.memory_space<vmem>>, %arg3: memref<128x256xbf16, #tpu.memory_space<vmem>>, %arg4: memref<1x256xf32, #tpu.memory_space<vmem>>, %arg5: memref<256x256xbf16, #tpu.memory_space<vmem>>, %arg6: memref<1x256xf32, #tpu.memory_space<vmem>>, %arg7: memref<256x128xbf16, #tpu.memory_space<vmem>>, %arg8: memref<1x128xf32, #tpu.memory_space<vmem>>, %arg9: memref<128x128xbf16, #tpu.memory_space<vmem>>, %arg10: memref<1x128xf32, #tpu.memory_space<vmem>>, %arg11: memref<8x128xf32, #tpu.memory_space<vmem>>, %arg12: memref<8x128xbf16, #tpu.memory_space<vmem>>) attributes {dimension_semantics = [#tpu.dimension_semantics<parallel>, #tpu.dimension_semantics<arbitrary>], iteration_bounds = array<i64: 2, 1>, scalar_prefetch = 0 : i64, scratch_operands = 1 : i64, tpu.core_type = #tpu.core_type<tc>, window_params = [{transform_indices = @transform_0, window_bounds = array<i64: 8, 128>}, {pipeline_mode = #tpu.pipeline_mode<synchronous>, transform_indices = @transform_1, window_bounds = array<i64: 128, 256>}, {pipeline_mode = #tpu.pipeline_mode<synchronous>, transform_indices = @transform_2, window_bounds = array<i64: 1, 256>}, {pipeline_mode = #tpu.pipeline_mode<synchronous>, transform_indices = @transform_3, window_bounds = array<i64: 256, 256>}, {pipeline_mode = #tpu.pipeline_mode<synchronous>, transform_indices = @transform_4, window_bounds = array<i64: 1, 256>}, {pipeline_mode = #tpu.pipeline_mode<synchronous>, transform_indices = @transform_5, window_bounds = array<i64: 256, 128>}, {pipeline_mode = #tpu.pipeline_mode<synchronous>, transform_indices = @transform_6, window_bounds = array<i64: 1, 128>}, {pipeline_mode = #tpu.pipeline_mode<synchronous>, transform_indices = @transform_7, window_bounds = array<i64: 128, 128>}, {pipeline_mode = #tpu.pipeline_mode<synchronous>, transform_indices = @transform_8, window_bounds = array<i64: 1, 128>}, {transform_indices = @transform_9, window_bounds = array<i64: 8, 128>}]} {
    %c0_i32 = arith.constant 0 : i32
    %0 = arith.cmpi eq, %arg1, %c0_i32 : i32
    %1 = arith.extui %0 : i1 to i32
    %c0_i32_0 = arith.constant 0 : i32
    %2 = arith.cmpi ne, %1, %c0_i32_0 : i32
    scf.if %2 {
      %c0_8 = arith.constant 0 : index
      %c0_9 = arith.constant 0 : index
      %10 = vector.load %arg2[%c0_8, %c0_9] : memref<8x128xbf16, #tpu.memory_space<vmem>>, vector<8x128xbf16>
      %c0_10 = arith.constant 0 : index
      %c0_11 = arith.constant 0 : index
      %11 = vector.load %arg3[%c0_10, %c0_11] : memref<128x256xbf16, #tpu.memory_space<vmem>>, vector<128x256xbf16>
      %cst_12 = arith.constant dense<0.000000e+00> : vector<8x256xf32>
      %12 = tpu.matmul %10, %11, %cst_12 {dimension_numbers = #tpu.dot_dimension_numbers<[1], [0], [0], [1], [0, 0, 1, 1], [], []>} : vector<8x128xbf16>, vector<128x256xbf16>, vector<8x256xf32> -> vector<8x256xf32>
      %c0_13 = arith.constant 0 : index
      %c0_14 = arith.constant 0 : index
      %13 = vector.load %arg4[%c0_13, %c0_14] : memref<1x256xf32, #tpu.memory_space<vmem>>, vector<1x256xf32>
      %14 = vector.broadcast %13 : vector<1x256xf32> to vector<8x256xf32>
      %15 = arith.addf %12, %14 : vector<8x256xf32>
      %cst_15 = arith.constant 5.000000e-01 : f32
      %16 = vector.broadcast %cst_15 : f32 to vector<8x256xf32>
      %17 = arith.mulf %16, %15 : vector<8x256xf32>
      %cst_16 = arith.constant 0.707106769 : f32
      %18 = vector.broadcast %cst_16 : f32 to vector<8x256xf32>
      %19 = arith.mulf %15, %18 : vector<8x256xf32>
      %cst_17 = arith.constant -3.8325069 : f32
      %cst_18 = arith.constant 3.8325069 : f32
      %20 = vector.broadcast %cst_17 : f32 to vector<8x256xf32>
      %21 = arith.maximumf %20, %19 : vector<8x256xf32>
      %22 = vector.broadcast %cst_18 : f32 to vector<8x256xf32>
      %23 = arith.minimumf %22, %21 : vector<8x256xf32>
      %24 = arith.mulf %23, %23 : vector<8x256xf32>
      %cst_19 = arith.constant 2.29050653E-4 : f32
      %25 = vector.broadcast %cst_19 : f32 to vector<8x256xf32>
      %26 = arith.mulf %25, %24 : vector<8x256xf32>
      %cst_20 = arith.constant 0.00340829091 : f32
      %27 = vector.broadcast %cst_20 : f32 to vector<8x256xf32>
      %28 = arith.addf %26, %27 : vector<8x256xf32>
      %29 = arith.mulf %28, %24 : vector<8x256xf32>
      %cst_21 = arith.constant 0.0509556942 : f32
      %30 = vector.broadcast %cst_21 : f32 to vector<8x256xf32>
      %31 = arith.addf %29, %30 : vector<8x256xf32>
      %32 = arith.mulf %31, %24 : vector<8x256xf32>
      %cst_22 = arith.constant 0.185208321 : f32
      %33 = vector.broadcast %cst_22 : f32 to vector<8x256xf32>
      %34 = arith.addf %32, %33 : vector<8x256xf32>
      %35 = arith.mulf %34, %24 : vector<8x256xf32>
      %cst_23 = arith.constant 1.12837911 : f32
      %36 = vector.broadcast %cst_23 : f32 to vector<8x256xf32>
      %37 = arith.addf %35, %36 : vector<8x256xf32>
      %cst_24 = arith.constant -1.17916031E-7 : f32
      %38 = vector.broadcast %cst_24 : f32 to vector<8x256xf32>
      %39 = arith.mulf %38, %24 : vector<8x256xf32>
      %cst_25 = arith.constant 2.35479656E-5 : f32
      %40 = vector.broadcast %cst_25 : f32 to vector<8x256xf32>
      %41 = arith.addf %39, %40 : vector<8x256xf32>
      %42 = arith.mulf %41, %24 : vector<8x256xf32>
      %cst_26 = arith.constant 0.00101796258 : f32
      %43 = vector.broadcast %cst_26 : f32 to vector<8x256xf32>
      %44 = arith.addf %42, %43 : vector<8x256xf32>
      %45 = arith.mulf %44, %24 : vector<8x256xf32>
      %cst_27 = arith.constant 0.0140704699 : f32
      %46 = vector.broadcast %cst_27 : f32 to vector<8x256xf32>
      %47 = arith.addf %45, %46 : vector<8x256xf32>
      %48 = arith.mulf %47, %24 : vector<8x256xf32>
      %cst_28 = arith.constant 0.110985048 : f32
      %49 = vector.broadcast %cst_28 : f32 to vector<8x256xf32>
      %50 = arith.addf %48, %49 : vector<8x256xf32>
      %51 = arith.mulf %50, %24 : vector<8x256xf32>
      %cst_29 = arith.constant 0.497469246 : f32
      %52 = vector.broadcast %cst_29 : f32 to vector<8x256xf32>
      %53 = arith.addf %51, %52 : vector<8x256xf32>
      %54 = arith.mulf %53, %24 : vector<8x256xf32>
      %cst_30 = arith.constant 1.000000e+00 : f32
      %55 = vector.broadcast %cst_30 : f32 to vector<8x256xf32>
      %56 = arith.addf %54, %55 : vector<8x256xf32>
      %57 = arith.mulf %23, %37 : vector<8x256xf32>
      %58 = tpu.reciprocal %56 : vector<8x256xf32> -> vector<8x256xf32>
      %59 = arith.mulf %57, %58 : vector<8x256xf32>
      %cst_31 = arith.constant 1.000000e+00 : f32
      %60 = vector.broadcast %cst_31 : f32 to vector<8x256xf32>
      %61 = arith.addf %60, %59 : vector<8x256xf32>
      %62 = arith.mulf %17, %61 : vector<8x256xf32>
      %63 = arith.truncf %62 : vector<8x256xf32> to vector<8x256xbf16>
      %c0_32 = arith.constant 0 : index
      %c0_33 = arith.constant 0 : index
      %64 = vector.load %arg5[%c0_32, %c0_33] : memref<256x256xbf16, #tpu.memory_space<vmem>>, vector<256x256xbf16>
      %cst_34 = arith.constant dense<0.000000e+00> : vector<8x256xf32>
      %65 = tpu.matmul %63, %64, %cst_34 {dimension_numbers = #tpu.dot_dimension_numbers<[1], [0], [0], [1], [0, 0, 1, 1], [], []>} : vector<8x256xbf16>, vector<256x256xbf16>, vector<8x256xf32> -> vector<8x256xf32>
      %c0_35 = arith.constant 0 : index
      %c0_36 = arith.constant 0 : index
      %66 = vector.load %arg6[%c0_35, %c0_36] : memref<1x256xf32, #tpu.memory_space<vmem>>, vector<1x256xf32>
      %67 = vector.broadcast %66 : vector<1x256xf32> to vector<8x256xf32>
      %68 = arith.addf %65, %67 : vector<8x256xf32>
      %cst_37 = arith.constant 5.000000e-01 : f32
      %69 = vector.broadcast %cst_37 : f32 to vector<8x256xf32>
      %70 = arith.mulf %69, %68 : vector<8x256xf32>
      %cst_38 = arith.constant 0.707106769 : f32
      %71 = vector.broadcast %cst_38 : f32 to vector<8x256xf32>
      %72 = arith.mulf %68, %71 : vector<8x256xf32>
      %cst_39 = arith.constant -3.8325069 : f32
      %cst_40 = arith.constant 3.8325069 : f32
      %73 = vector.broadcast %cst_39 : f32 to vector<8x256xf32>
      %74 = arith.maximumf %73, %72 : vector<8x256xf32>
      %75 = vector.broadcast %cst_40 : f32 to vector<8x256xf32>
      %76 = arith.minimumf %75, %74 : vector<8x256xf32>
      %77 = arith.mulf %76, %76 : vector<8x256xf32>
      %cst_41 = arith.constant 2.29050653E-4 : f32
      %78 = vector.broadcast %cst_41 : f32 to vector<8x256xf32>
      %79 = arith.mulf %78, %77 : vector<8x256xf32>
      %cst_42 = arith.constant 0.00340829091 : f32
      %80 = vector.broadcast %cst_42 : f32 to vector<8x256xf32>
      %81 = arith.addf %79, %80 : vector<8x256xf32>
      %82 = arith.mulf %81, %77 : vector<8x256xf32>
      %cst_43 = arith.constant 0.0509556942 : f32
      %83 = vector.broadcast %cst_43 : f32 to vector<8x256xf32>
      %84 = arith.addf %82, %83 : vector<8x256xf32>
      %85 = arith.mulf %84, %77 : vector<8x256xf32>
      %cst_44 = arith.constant 0.185208321 : f32
      %86 = vector.broadcast %cst_44 : f32 to vector<8x256xf32>
      %87 = arith.addf %85, %86 : vector<8x256xf32>
      %88 = arith.mulf %87, %77 : vector<8x256xf32>
      %cst_45 = arith.constant 1.12837911 : f32
      %89 = vector.broadcast %cst_45 : f32 to vector<8x256xf32>
      %90 = arith.addf %88, %89 : vector<8x256xf32>
      %cst_46 = arith.constant -1.17916031E-7 : f32
      %91 = vector.broadcast %cst_46 : f32 to vector<8x256xf32>
      %92 = arith.mulf %91, %77 : vector<8x256xf32>
      %cst_47 = arith.constant 2.35479656E-5 : f32
      %93 = vector.broadcast %cst_47 : f32 to vector<8x256xf32>
      %94 = arith.addf %92, %93 : vector<8x256xf32>
      %95 = arith.mulf %94, %77 : vector<8x256xf32>
      %cst_48 = arith.constant 0.00101796258 : f32
      %96 = vector.broadcast %cst_48 : f32 to vector<8x256xf32>
      %97 = arith.addf %95, %96 : vector<8x256xf32>
      %98 = arith.mulf %97, %77 : vector<8x256xf32>
      %cst_49 = arith.constant 0.0140704699 : f32
      %99 = vector.broadcast %cst_49 : f32 to vector<8x256xf32>
      %100 = arith.addf %98, %99 : vector<8x256xf32>
      %101 = arith.mulf %100, %77 : vector<8x256xf32>
      %cst_50 = arith.constant 0.110985048 : f32
      %102 = vector.broadcast %cst_50 : f32 to vector<8x256xf32>
      %103 = arith.addf %101, %102 : vector<8x256xf32>
      %104 = arith.mulf %103, %77 : vector<8x256xf32>
      %cst_51 = arith.constant 0.497469246 : f32
      %105 = vector.broadcast %cst_51 : f32 to vector<8x256xf32>
      %106 = arith.addf %104, %105 : vector<8x256xf32>
      %107 = arith.mulf %106, %77 : vector<8x256xf32>
      %cst_52 = arith.constant 1.000000e+00 : f32
      %108 = vector.broadcast %cst_52 : f32 to vector<8x256xf32>
      %109 = arith.addf %107, %108 : vector<8x256xf32>
      %110 = arith.mulf %76, %90 : vector<8x256xf32>
      %111 = tpu.reciprocal %109 : vector<8x256xf32> -> vector<8x256xf32>
      %112 = arith.mulf %110, %111 : vector<8x256xf32>
      %cst_53 = arith.constant 1.000000e+00 : f32
      %113 = vector.broadcast %cst_53 : f32 to vector<8x256xf32>
      %114 = arith.addf %113, %112 : vector<8x256xf32>
      %115 = arith.mulf %70, %114 : vector<8x256xf32>
      %116 = arith.truncf %115 : vector<8x256xf32> to vector<8x256xbf16>
      %c0_54 = arith.constant 0 : index
      %c0_55 = arith.constant 0 : index
      %117 = vector.load %arg7[%c0_54, %c0_55] : memref<256x128xbf16, #tpu.memory_space<vmem>>, vector<256x128xbf16>
      %cst_56 = arith.constant dense<0.000000e+00> : vector<8x128xf32>
      %118 = tpu.matmul %116, %117, %cst_56 {dimension_numbers = #tpu.dot_dimension_numbers<[1], [0], [0], [1], [0, 0, 1, 1], [], []>} : vector<8x256xbf16>, vector<256x128xbf16>, vector<8x128xf32> -> vector<8x128xf32>
      %c0_57 = arith.constant 0 : index
      %c0_58 = arith.constant 0 : index
      %119 = vector.load %arg8[%c0_57, %c0_58] : memref<1x128xf32, #tpu.memory_space<vmem>>, vector<1x128xf32>
      %120 = vector.broadcast %119 : vector<1x128xf32> to vector<8x128xf32>
      %121 = arith.addf %118, %120 : vector<8x128xf32>
      %122 = arith.mulf %121, %121 : vector<8x128xf32>
      %cst_59 = arith.constant dense<0.000000e+00> : vector<8xf32>
      %123 = vector.multi_reduction <add>, %122, %cst_59 [1] : vector<8x128xf32> to vector<8xf32>
      %124 = vector.shape_cast %123 : vector<8xf32> to vector<8x1xf32>
      %cst_60 = arith.constant 1.000000e-24 : f32
      %125 = vector.broadcast %cst_60 : f32 to vector<8x1xf32>
      %126 = arith.maximumf %124, %125 : vector<8x1xf32>
      %127 = math.rsqrt %126 : vector<8x1xf32>
      %128 = vector.broadcast %127 : vector<8x1xf32> to vector<8x128xf32>
      %129 = arith.mulf %121, %128 : vector<8x128xf32>
      %130 = arith.truncf %129 : vector<8x128xf32> to vector<8x128xbf16>
      %c0_61 = arith.constant 0 : index
      %c0_62 = arith.constant 0 : index
      %131 = vector.load %arg12[%c0_61, %c0_62] : memref<8x128xbf16, #tpu.memory_space<vmem>>, vector<8x128xbf16>
      tpu.vector_store %arg12[%c0_61, %c0_62], %130 {strides = array<i32>} : memref<8x128xbf16, #tpu.memory_space<vmem>>, vector<8x128xbf16>,
    } else {
    }
    %c0 = arith.constant 0 : index
    %c0_1 = arith.constant 0 : index
    %3 = vector.load %arg12[%c0, %c0_1] : memref<8x128xbf16, #tpu.memory_space<vmem>>, vector<8x128xbf16>
    %c0_2 = arith.constant 0 : index
    %c0_3 = arith.constant 0 : index
    %4 = vector.load %arg9[%c0_2, %c0_3] : memref<128x128xbf16, #tpu.memory_space<vmem>>, vector<128x128xbf16>
    %cst = arith.constant dense<0.000000e+00> : vector<8x128xf32>
    %5 = tpu.matmul %3, %4, %cst {dimension_numbers = #tpu.dot_dimension_numbers<[1], [0], [0], [1], [0, 0, 1, 1], [], []>} : vector<8x128xbf16>, vector<128x128xbf16>, vector<8x128xf32> -> vector<8x128xf32>
    %c0_4 = arith.constant 0 : index
    %c0_5 = arith.constant 0 : index
    %6 = vector.load %arg10[%c0_4, %c0_5] : memref<1x128xf32, #tpu.memory_space<vmem>>, vector<1x128xf32>
    %7 = vector.broadcast %6 : vector<1x128xf32> to vector<8x128xf32>
    %8 = arith.addf %5, %7 : vector<8x128xf32>
    %c0_6 = arith.constant 0 : index
    %c0_7 = arith.constant 0 : index
    %9 = vector.load %arg11[%c0_6, %c0_7] : memref<8x128xf32, #tpu.memory_space<vmem>>, vector<8x128xf32>
    tpu.vector_store %arg11[%c0_6, %c0_7], %8 {strides = array<i32>} : memref<8x128xf32, #tpu.memory_space<vmem>>, vector<8x128xf32>,
    return
  }
  func.func @transform_0(%arg0: i32, %arg1: i32) -> (i32, i32) {
    %c0_i32 = arith.constant 0 : i32
    %c0_i32_0 = arith.constant 0 : i32
    return %arg0, %c0_i32 : i32, i32
  }
  func.func @transform_1(%arg0: i32, %arg1: i32) -> (i32, i32) {
    %c0_i32 = arith.constant 0 : i32
    %c0_i32_0 = arith.constant 0 : i32
    %c0_i32_1 = arith.constant 0 : i32
    return %c0_i32, %c0_i32_0 : i32, i32
  }
  func.func @transform_2(%arg0: i32, %arg1: i32) -> (i32, i32) {
    %c0_i32 = arith.constant 0 : i32
    %c0_i32_0 = arith.constant 0 : i32
    %c0_i32_1 = arith.constant 0 : i32
    return %c0_i32, %c0_i32_0 : i32, i32
  }
  func.func @transform_3(%arg0: i32, %arg1: i32) -> (i32, i32) {
    %c0_i32 = arith.constant 0 : i32
    %c0_i32_0 = arith.constant 0 : i32
    %c0_i32_1 = arith.constant 0 : i32
    return %c0_i32, %c0_i32_0 : i32, i32
  }
  func.func @transform_4(%arg0: i32, %arg1: i32) -> (i32, i32) {
    %c0_i32 = arith.constant 0 : i32
    %c0_i32_0 = arith.constant 0 : i32
    %c0_i32_1 = arith.constant 0 : i32
    return %c0_i32, %c0_i32_0 : i32, i32
  }
  func.func @transform_5(%arg0: i32, %arg1: i32) -> (i32, i32) {
    %c0_i32 = arith.constant 0 : i32
    %c0_i32_0 = arith.constant 0 : i32
    %c0_i32_1 = arith.constant 0 : i32
    return %c0_i32, %c0_i32_0 : i32, i32
  }
  func.func @transform_6(%arg0: i32, %arg1: i32) -> (i32, i32) {
    %c0_i32 = arith.constant 0 : i32
    %c0_i32_0 = arith.constant 0 : i32
    %c0_i32_1 = arith.constant 0 : i32
    return %c0_i32, %c0_i32_0 : i32, i32
  }
  func.func @transform_7(%arg0: i32, %arg1: i32) -> (i32, i32) {
    %c0_i32 = arith.constant 0 : i32
    %c0_i32_0 = arith.constant 0 : i32
    %c0_i32_1 = arith.constant 0 : i32
    return %c0_i32, %c0_i32_0 : i32, i32
  }
  func.func @transform_8(%arg0: i32, %arg1: i32) -> (i32, i32) {
    %c0_i32 = arith.constant 0 : i32
    %c0_i32_0 = arith.constant 0 : i32
    %c0_i32_1 = arith.constant 0 : i32
    return %c0_i32, %c0_i32_0 : i32, i32
  }
  func.func @transform_9(%arg0: i32, %arg1: i32) -> (i32, i32) {
    %c0_i32 = arith.constant 0 : i32
    return %arg0, %arg1 : i32, i32
  }
}

</mosaic_0001>

<bundles_post_ra>
// kernel: tpu_custom_call.1
= control target key start
LH: loop header
LB: loop body
LE: loop exit
PB: predicated region body
PF: predicated region fallthrough
CT: control target
= control target key end

     0   :  { %s2374_s0 = inlined_call_operand.hbm [shape: bf16[16,128], index: 0, kind: input, shape index: {}]   ;;  %s2375_s1 = inlined_call_operand.hbm [shape: bf16[128,256], index: 1, kind: input, shape index: {}]   ;;  %s2376_s2 = inlined_call_operand.vmem [shape: f32[1,256], index: 2, kind: input, shape index: {}]   ;;  %s2377_s3 = inlined_call_operand.hbm [shape: bf16[256,256], index: 3, kind: input, shape index: {}]   ;;  %s2378_s4 = inlined_call_operand.vmem [shape: f32[1,256], index: 4, kind: input, shape index: {}]   ;;  %s2379_s5 = inlined_call_operand.hbm [shape: bf16[256,128], index: 5, kind: input, shape index: {}]   ;;  %s2380_s6 = inlined_call_operand.vmem [shape: f32[1,128], index: 6, kind: input, shape index: {}]   ;;  %s2381_s7 = inlined_call_operand.hbm [shape: bf16[128,128], index: 7, kind: input, shape index: {}]   ;;  %s2382_s8 = inlined_call_operand.vmem [shape: f32[1,128], index: 8, kind: input, shape index: {}]   ;;  %s2383_s9 = inlined_call_operand.hbm [shape: f32[16,128], index: 9, kind: output, shape index: {}]  }
   0x1   :  { %2393 = sst [smem:[#allocation17_spill]] %s2375_s1 }
   0x2   :  { %2394 = sst [smem:[#allocation18_spill]] %s2377_s3 }
   0x3   :  { %2395 = sst [smem:[#allocation19_spill]] %s2382_s8 }
   0x4   :  { %2396 = sst [smem:[#allocation20_spill]] %s2383_s9 }
   0x5   :  { %14 = vsyncpa [#allocation4], 0 }
   0x6   :  { %16 = vsyncpa [#allocation4 + $0x1], 0 }
   0x7   :  { %17 = vsyncpa [#allocation7], 0 }
   0x8   :  { %18 = vsyncpa [#allocation10], 0 }
   0x9   :  { %19 = vsyncpa [#allocation5], 0 }
   0xa   :  { %21 = vsyncpa [#allocation5 + $0x1], 0  ;;  %s2035_s30 = smov 0   ;;  %s2037_s10 = smov 0  }
   0xb   :  { %s2039_s11 = smov 0   ;;  %s2041_s12 = smov 0  }
   0xc   :  { %s2043_s13 = smov 0   ;;  %s2045_s14 = smov 0  }
   0xd LB: > { %s2384_s15 = sadd.s32 4294967295, %s1970_s14   ;;  %p1374_p0 = scmp.ge.s32.totalorder %s1970_s14, 1  ;;  %s1970_s14 = sphi %s2045_s14, %s27_s14   ;;  %s1966_s13 = sphi %s2043_s13, %s2424_s13   ;;  %s1962_s12 = sphi %s2041_s12, %s2423_s12   ;;  %s1958_s11 = sphi %s2039_s11, %s2422_s11   ;;  %s1954_s10 = sphi %s2037_s10, %s2421_s10   ;;  %s1950_s30 = sphi %s2035_s30, %s2420_s30  }
   0xe   : > { %p2069_p1 = scmp.eq.s32.totalorder %s2384_s15, 0  ;;  %p266_p2 = scmp.lt.s32.totalorder %s1970_s14, 3 }
   0xf   : > { %s1972_s18 = smov [#allocation6]   ;;  %s1973_s21 = smov [#allocation9]  }
  0x10   : > { %s2397_s16 = scalar_select %p2069_p1, 1, 0 }
  0x11   : > { %p2074_p3 = pnand %p1374_p0, %p266_p2  ;;  %s278_s19 = sshll.u32 %s1972_s18, 4  ;;  %s2078_s19 = int_to_ptr.vmem [resolvable:$true] %s278_s19 }
  0x12   : > { %s310_s22 = sshll.u32 %s1973_s21, 4  ;;  %s2400_s1 = sld [smem:[#allocation17_spill]]  ;;  %s2089_s22 = int_to_ptr.vmem [resolvable:$true] %s310_s22 }
  0x13   : > { %s2398_s17 = scalar_select %p2074_p3, 1, 0 }
  0x14   : > { %p1542_p4 = pneg %p2074_p3 }
  0x16   : > { %p2085_p6 = pnand %p1542_p4, %p2069_p1 }
  0x18   : > { %s1738_s25 = scalar_lea.hbm %s2400_s1, 2048  ;;  %p2099_p8 = pneg %p2085_p6 }
  0x19   : > { %p1739_p7 = scmp.ne.s32.totalorder %s2400_s1, %s1738_s25  ;;  %p1745_p11 = scmp.lt.u32.totalorder %s1738_s25, %s2400_s1 }
  0x1b   : > { %p1741_p9 = pnand %p2099_p8, %p1739_p7 }
  0x1d   : > { %p1742_p10 = pneg %p1741_p9 }
  0x1f   : > { %p1747_p12 = pnand %p1745_p11, %p1742_p10 }
  0x21   : > { %1750 = shalt.err (!%p1747_p12)
}
  0x22   : > { %s1751_s21 = scalar_lea.vmem %s2078_s19, 2048  ;;  %p1759_p4 = scmp.lt.s32.totalorder %s2078_s19, %s2078_s19 }
  0x23   : > { %p1752_p13 = scmp.ne.s32.totalorder %s2078_s19, %s1751_s21  ;;  %p1760_p5 = scmp.lt.s32.totalorder %s1751_s21, %s1751_s21 }
  0x25   : > { %p1754_p0 = pnand %p1752_p13, %p2099_p8  ;;  %p1761_p7 = por %p1760_p5, %p1759_p4 }
  0x27   : > { %p1755_p2 = pneg %p1754_p0 }
  0x29   : > { %p1762_p9 = pnand %p1761_p7, %p1755_p2 }
  0x2b   : > { %1765 = shalt.err (!%p1762_p9)
}
  0x2c   : > { %s2386_s23 = smov 128   ;;  %s2387_s24 = smov 8  }
  0x2d   : > { %1545 = dma.hbm_to_vmem [thread:$0]  (!%p2085_p6), %s2400_s1, 2048, %s2078_s19, [#allocation7], %s2386_s23, %s2386_s23, %s2387_s24  }
  0x2e   : > { %s1766_s18 = scalar_lea.hbm %s2379_s5, 2048 }
  0x2f   : > { %p1767_p5 = scmp.ne.s32.totalorder %s2379_s5, %s1766_s18  ;;  %p1773_p12 = scmp.lt.u32.totalorder %s1766_s18, %s2379_s5 }
  0x31   : > { %p1769_p10 = pnand %p1767_p5, %p2099_p8 }
  0x33   : > { %p1770_p11 = pneg %p1769_p10 }
  0x35   : > { %p1775_p13 = pnand %p1773_p12, %p1770_p11 }
  0x37   : > { %1778 = shalt.err (!%p1775_p13)
}
  0x38   : > { %s1779_s19 = scalar_lea.vmem %s2089_s22, 2048  ;;  %p1787_p7 = scmp.lt.s32.totalorder %s2089_s22, %s2089_s22 }
  0x39   : > { %p1780_p0 = scmp.ne.s32.totalorder %s2089_s22, %s1779_s19  ;;  %p1788_p9 = scmp.lt.s32.totalorder %s1779_s19, %s1779_s19 }
  0x3b   : > { %p1782_p2 = pnand %p1780_p0, %p2099_p8  ;;  %p1789_p5 = por %p1788_p9, %p1787_p7 }
  0x3d   : > { %p1783_p4 = pneg %p1782_p2 }
  0x3f   : > { %p1790_p10 = pnand %p1789_p5, %p1783_p4 }
  0x41   : > { %1793 = shalt.err (!%p1790_p10)
}
  0x42   : > { %s2391_s15 = smov 64   ;;  %s1977_s8 = smov 4  }
  0x43   : > { %1551 = dma.hbm_to_vmem [thread:$0]  (!%p2085_p6), %s2379_s5, 2048, %s2089_s22, [#allocation10], %s2391_s15, %s2391_s15, %s1977_s8  }
  0x44   : > { %s1978_s26 = smov [#allocation8]   ;;  %s1979_s29 = smov [#allocation11]  }
  0x45   : > { %s294_s27 = sshll.u32 %s1978_s26, 4  ;;  %s326_s18 = sshll.u32 %s1979_s29, 4  ;;  %s295_s27 = int_to_ptr.vmem [resolvable:$true] %s294_s27  ;;  %s2149_s18 = int_to_ptr.vmem [resolvable:$true] %s326_s18 }
  0x46   : > { %s2402_s3 = sld [smem:[#allocation18_spill]] }
  0x4c   : > { %s1794_s23 = scalar_lea.hbm %s2402_s3, 4096 }
  0x4d   : > { %p1795_p11 = scmp.ne.s32.totalorder %s2402_s3, %s1794_s23  ;;  %p1801_p0 = scmp.lt.u32.totalorder %s1794_s23, %s2402_s3 }
  0x4f   : > { %p1797_p12 = pnand %p1795_p11, %p2099_p8 }
  0x51   : > { %p1798_p13 = pneg %p1797_p12 }
  0x53   : > { %p1803_p2 = pnand %p1801_p0, %p1798_p13 }
  0x55   : > { %1806 = shalt.err (!%p1803_p2)
}
  0x56   : > { %s1807_s25 = scalar_lea.vmem %s295_s27, 4096  ;;  %p1815_p5 = scmp.lt.s32.totalorder %s295_s27, %s295_s27 }
  0x57   : > { %p1808_p4 = scmp.ne.s32.totalorder %s295_s27, %s1807_s25  ;;  %p1816_p10 = scmp.lt.s32.totalorder %s1807_s25, %s1807_s25 }
  0x59   : > { %p1810_p7 = pnand %p1808_p4, %p2099_p8  ;;  %p1817_p3 = por %p1816_p10, %p1815_p5 }
  0x5b   : > { %p1811_p9 = pneg %p1810_p7 }
  0x5d   : > { %p1818_p1 = pnand %p1817_p3, %p1811_p9 }
  0x5f   : > { %1821 = shalt.err (!%p1818_p1)
}
  0x60   : > { %s2403_s1 = smov 8   ;;  %s2404_s24 = smov 128  }
  0x61   : > { %1548 = dma.hbm_to_vmem [thread:$0]  (!%p2085_p6), %s2402_s3, 4096, %s295_s27, [#allocation7], %s2404_s24, %s2404_s24, %s2403_s1  }
  0x62   : > { %s1822_s19 = scalar_lea.hbm %s2381_s7, 1024 }
  0x63   : > { %p1823_p11 = scmp.ne.s32.totalorder %s2381_s7, %s1822_s19  ;;  %p1829_p12 = scmp.lt.u32.totalorder %s1822_s19, %s2381_s7 }
  0x65   : > { %p1825_p1 = pnand %p1823_p11, %p2099_p8 }
  0x67   : > { %p1826_p3 = pneg %p1825_p1 }
  0x69   : > { %p1831_p13 = pnand %p1829_p12, %p1826_p3 }
  0x6b   : > { %1834 = shalt.err (!%p1831_p13)
}
  0x6c   : > { %s1835_s27 = scalar_lea.vmem %s2149_s18, 1024  ;;  %p1843_p7 = scmp.lt.s32.totalorder %s2149_s18, %s2149_s18 }
  0x6d   : > { %p1836_p0 = scmp.ne.s32.totalorder %s2149_s18, %s1835_s27  ;;  %p1844_p9 = scmp.lt.s32.totalorder %s1835_s27, %s1835_s27 }
  0x6f   : > { %p1838_p2 = pnand %p1836_p0, %p2099_p8  ;;  %p1845_p5 = por %p1844_p9, %p1843_p7 }
  0x71   : > { %p1839_p4 = pneg %p1838_p2 }
  0x73   : > { %p1846_p10 = pnand %p1845_p5, %p1839_p4 }
  0x75   : > { %1849 = shalt.err (!%p1846_p10)
}
  0x76   : > { %s2405_s15 = smov 64   ;;  %s1373_s20 = sadd.s32 4294967294, %s1970_s14  }
  0x77   : > { %1554 = dma.hbm_to_vmem [thread:$0]  (!%p2085_p6), %s2381_s7, 1024, %s2149_s18, [#allocation10], %s2405_s15, %s2405_s15, %s1977_s8  }
  0x78   : > { %s39_s28 = sadd.s32 1, %s1966_s13  ;;  %s46_s26 = sadd.s32 1, %s1958_s11 }
  0x79   : > { %p41_p8 = scmp.ge.s32.totalorder %s39_s28, 2  ;;  %p53_p11 = scmp.ne.s32.totalorder %s1958_s11, %s1954_s10 }
  0x7a   : > { %p54_p1 = scmp.eq.s32.totalorder %s1970_s14, 0  ;;  %p59_p12 = scmp.ne.s32.totalorder %s1954_s10, %s1950_s30 }
  0x7b   : > { %s2426_s28 = smov (%p41_p8, %s39_s28), 0  ;;  %s2407_s18 = sadd.s32 4294967295, %s1970_s14  }
  0x7c   : > { %p2206_p3 = por %p54_p1, %p53_p11  ;;  %s43_s8 = ssub.s32 %s1966_s13, %s2426_s28 }
  0x7d   : > { %p253_p6 = scmp.eq.s32.totalorder %s2407_s18, 1  ;;  %p44_p13 = scmp.eq.s32.totalorder %s43_s8, 0 }
  0x7e   : > { %p2408_p0 = scmp.ne.s32.totalorder %s2397_s16, 0  ;;  %p259_p7 = scmp.eq.s32.totalorder %s1373_s20, 1 }
  0x7f   : > { %p2222_p4 = por %p253_p6, %p53_p11  ;;  %p1567_p5 = scmp.lt.s32.totalorder %s1970_s14, 2 }
  0x80   : > { %p2218_p2 = por %p2408_p0, %p59_p12  ;;  %p2229_p9 = por %p259_p7, %p59_p12 }
  0x81   : > { %s2410_s21 = scalar_select %p2222_p4, 1, 0 }
  0x82   : > { %s2227_s19 = scalar_select %p44_p13, %s1958_s11, %s46_s26  }
  0x83   : > { %s2411_s9 = scalar_select %p2229_p9, 1, 0 }
  0x84   : > { %s343_s22 = sand.u32 1, %s1958_s11   ;;  %s1381_s25 = sshll.u32 %s1966_s13, 6 }
  0x85   : > { %s1380_s27 = sshll.u32 %s343_s22, 2  ;;  %s2239_s24 = scalar_lea.hbm %s2374_s0, %s1381_s25 }
  0x86   : > { %s347_s20 = scalar_lea.vmem [#allocation3], %s1380_s27  ;;  %p2243_p10 = pnand %p1567_p5, %p2206_p3 }
  0x87   : > { %s354_s26 = sshll.u32 %s347_s20, 4  ;;  %s344_s18 = scalar_lea.sflag [#allocation4], %s343_s22  ;;  %s2247_s26 = int_to_ptr.vmem [resolvable:$true] %s354_s26 }
  0x88   : > { %s1850_s3 = scalar_lea.hbm %s2239_s24, 64  ;;  %p1852_p11 = pneg %p2243_p10 }
  0x89   : > { %p1851_p8 = scmp.ne.s32.totalorder %s2239_s24, %s1850_s3  ;;  %s1855_s23 = scalar_lea.hbm %s2374_s0, 128 }
  0x8a   : > { %p1856_p3 = scmp.lt.u32.totalorder %s2239_s24, %s2374_s0  ;;  %p1857_p6 = scmp.lt.u32.totalorder %s1855_s23, %s1850_s3 }
  0x8b   : > { %p1853_p1 = pnand %p1852_p11, %p1851_p8  ;;  %p1859_p0 = scmp.lt.u32.totalorder %s1850_s3, %s2239_s24 }
  0x8c   : > { %p1858_p13 = por %p1857_p6, %p1856_p3 }
  0x8d   : > { %p1854_p12 = pneg %p1853_p1 }
  0x8e   : > { %p1860_p7 = por %p1859_p0, %p1858_p13 }
  0x90   : > { %p1861_p5 = pnand %p1860_p7, %p1854_p12 }
  0x92   : > { %1864 = shalt.err (!%p1861_p5)
}
  0x93   : > { %s1865_s22 = scalar_lea.vmem %s2247_s26, 64  ;;  %s1980_s20 = smov [#allocation3]  }
  0x94   : > { %p1866_p8 = scmp.ne.s32.totalorder %s2247_s26, %s1865_s22  ;;  %s1870_s25 = sshll.u32 %s1980_s20, 4  ;;  %s1871_s25 = int_to_ptr.vmem [resolvable:$false] %s1870_s25 }
  0x95   : > { %s1872_s27 = scalar_lea.vmem %s1871_s25, 128  ;;  %p1873_p4 = scmp.lt.s32.totalorder %s2247_s26, %s1871_s25 }
  0x96   : > { %p1868_p1 = pnand %p1866_p8, %p1852_p11  ;;  %p1874_p3 = scmp.lt.s32.totalorder %s1872_s27, %s1865_s22 }
  0x98   : > { %p1869_p9 = pneg %p1868_p1  ;;  %p1875_p6 = por %p1874_p3, %p1873_p4 }
  0x9a   : > { %p1876_p13 = pnand %p1875_p6, %p1869_p9 }
  0x9c   : > { %1879 = shalt.err (!%p1876_p13)
}
  0x9d   : > { %1558 = dma.hbm_to_vmem [thread:$0]  (!%p2243_p10), %s2239_s24, 64, %s2247_s26, %s344_s18  }
  0x9e   : > { %p2413_p12 = scmp.ne.s32.totalorder %s2398_s17, 0 }
  0x9f   : > { %s2277_s3 = sand.u32 (!%p2413_p12), 1, %s1954_s10  }
  0xa0   : > { %363 = sbr.rel (%p2413_p12) target bundleno = 1350 (0x546), region = 56  ;;  %s1383_s23 = sshll.u32 (!%p2413_p12), %s2277_s3, 2 }
  0xa1   : > { %s366_s15 = scalar_lea.sflag (!%p2413_p12), [#allocation4], %s2277_s3  ;;  %s2281_s1 = scalar_lea.vmem (!%p2413_p12), [#allocation3], %s1383_s23 }
  0xa7   : > { %1933 = dma.done.wait (%p2218_p2), %s366_s15, 64  }
  0xa8   : > { %1935 = vsyncadd (%p2218_p2), %s366_s15, 4294967232  ;;  %p2414_p4 = scmp.ne.s32.totalorder %s2397_s16, 0 }
  0xaa   : > { %1937 = dma.done.wait (%p2414_p4), [#allocation7], 6144  }
  0xab   : > { %1939 = vsyncadd (%p2414_p4), [#allocation7], 4294961152 }
  0xac   : > { %1941 = dma.done.wait (%p2414_p4), [#allocation10], 3072  }
  0xad   : > { %1943 = vsyncadd (%p2414_p4), [#allocation10], 4294964224  ;;  %v1981_v0 = vmov 0   ;;  %v1632_v1 = vld [vmem:[#allocation6 + $0x4] ss:$8 sps:$4 sm:$0xff]   ;;  %v444_v50 = vlaneseq  ;;  %vm1983_vm0 = vmmov 0  }
  0xae   : > { %566 = vmatprep.mubr.bf16.mxu0 %v1981_v0  ;;  %v1634_v2 = vld [vmem:[#allocation6] ss:$8 sps:$4 sm:$0xff]   ;;  %534 = vmatprep.subr.bf16.mxu0 %v1632_v1  ;;  %v1635_v3 = vld [vmem:[#allocation6 + $0x14] ss:$8 sps:$4 sm:$0xff]   ;;  %v1637_v4 = vld [vmem:[#allocation6 + $0x10] ss:$8 sps:$4 sm:$0xff]  }
  0xaf   : > { %535 = vmatpush1.bf16.msra.mxu0 %v1634_v2  ;;  %v1638_v5 = vld [vmem:[#allocation6 + $0x24] ss:$8 sps:$4 sm:$0xff]   ;;  %v1640_v6 = vld [vmem:[#allocation6 + $0x20] ss:$8 sps:$4 sm:$0xff]   ;;  %v1641_v7 = vld [vmem:[#allocation6 + $0x34] ss:$8 sps:$4 sm:$0xff]  }
  0xb0   : > { %536 = vmatprep.subr.bf16.mxu0 %v1635_v3  ;;  %v1643_v8 = vld [vmem:[#allocation6 + $0x30] ss:$8 sps:$4 sm:$0xff]   ;;  %v1644_v9 = vld [vmem:[#allocation6 + $0x44] ss:$8 sps:$4 sm:$0xff]   ;;  %v1658_v11 = vld [vmem:[#allocation8] ss:$8 sps:$4 sm:$0xff]  }
  0xb1   : > { %v1656_v10 = vld [vmem:[#allocation8 + $0x4] ss:$8 sps:$4 sm:$0xff]   ;;  %v1646_v12 = vld [vmem:[#allocation6 + $0x40] ss:$8 sps:$4 sm:$0xff]   ;;  %v1659_v13 = vld [vmem:[#allocation8 + $0x14] ss:$8 sps:$4 sm:$0xff]  }
  0xb2   : > { %841 = vmatprep.subr.bf16.mxu1 %v1656_v10  ;;  %v1647_v14 = vld [vmem:[#allocation6 + $0x54] ss:$8 sps:$4 sm:$0xff]   ;;  %v1661_v15 = vld [vmem:[#allocation8 + $0x10] ss:$8 sps:$4 sm:$0xff]   ;;  %v1662_v16 = vld [vmem:[#allocation8 + $0x24] ss:$8 sps:$4 sm:$0xff]  }
  0xb3   : > { %537 = vmatpush1.bf16.msra.mxu0 %v1637_v4  ;;  %842 = vmatpush1.bf16.msra.mxu1 %v1658_v11  ;;  %v1664_v17 = vld [vmem:[#allocation8 + $0x20] ss:$8 sps:$4 sm:$0xff]   ;;  %v1649_v18 = vld [vmem:[#allocation6 + $0x50] ss:$8 sps:$4 sm:$0xff]   ;;  %v1650_v19 = vld [vmem:[#allocation6 + $0x64] ss:$8 sps:$4 sm:$0xff]  }
  0xb4   : > { %538 = vmatprep.subr.bf16.mxu0 %v1638_v5  ;;  %843 = vmatprep.subr.bf16.mxu1 %v1659_v13  ;;  %v1652_v20 = vld [vmem:[#allocation6 + $0x60] ss:$8 sps:$4 sm:$0xff]   ;;  %v1653_v21 = vld [vmem:[#allocation6 + $0x74] ss:$8 sps:$4 sm:$0xff]   ;;  %v1655_v22 = vld [vmem:[#allocation6 + $0x70] ss:$8 sps:$4 sm:$0xff]  }
  0xb5   : > { %v425_v23 = vld [vmem:[%s2281_s1] sm:$0xf]  ;;  %v1668_v26 = vld [vmem:[#allocation8 + $0x44] ss:$8 sps:$4 sm:$0xff]   ;;  %v1670_v27 = vld [vmem:[#allocation8 + $0x40] ss:$8 sps:$4 sm:$0xff]  }
  0xb6   : > { %v1665_v24 = vld [vmem:[#allocation8 + $0x34] ss:$8 sps:$4 sm:$0xff]   ;;  %v1667_v25 = vld [vmem:[#allocation8 + $0x30] ss:$8 sps:$4 sm:$0xff]   ;;  %v1674_v30 = vld [vmem:[#allocation8 + $0x64] ss:$8 sps:$4 sm:$0xff]  }
  0xb7   : > { %539 = vmatpush1.bf16.msra.mxu0 %v1640_v6  ;;  %844 = vmatpush1.bf16.msra.mxu1 %v1661_v15  ;;  %v1671_v28 = vld [vmem:[#allocation8 + $0x54] ss:$8 sps:$4 sm:$0xff]   ;;  %v1673_v29 = vld [vmem:[#allocation8 + $0x50] ss:$8 sps:$4 sm:$0xff]   ;;  %v1676_v31 = vld [vmem:[#allocation8 + $0x60] ss:$8 sps:$4 sm:$0xff]  }
  0xb8   : > { %540 = vmatprep.subr.bf16.mxu0 %v1641_v7  ;;  %845 = vmatprep.subr.bf16.mxu1 %v1662_v16  ;;  %v1677_v32 = vld [vmem:[#allocation8 + $0x74] ss:$8 sps:$4 sm:$0xff]   ;;  %v1679_v33 = vld [vmem:[#allocation8 + $0x70] ss:$8 sps:$4 sm:$0xff]   ;;  %v1680_v34 = vld [vmem:[#allocation8 + $0x84] ss:$8 sps:$4 sm:$0xff]  }
  0xb9   : > { %v1682_v35 = vld [vmem:[#allocation8 + $0x80] ss:$8 sps:$4 sm:$0xff]   ;;  %v1683_v36 = vld [vmem:[#allocation8 + $0x94] ss:$8 sps:$4 sm:$0xff]   ;;  %v1685_v37 = vld [vmem:[#allocation8 + $0x90] ss:$8 sps:$4 sm:$0xff]  }
  0xba   : > { %v1686_v38 = vld [vmem:[#allocation8 + $0xa4] ss:$8 sps:$4 sm:$0xff]   ;;  %v1688_v39 = vld [vmem:[#allocation8 + $0xa0] ss:$8 sps:$4 sm:$0xff]   ;;  %v1689_v40 = vld [vmem:[#allocation8 + $0xb4] ss:$8 sps:$4 sm:$0xff]  }
  0xbb   : > { %541 = vmatpush1.bf16.msra.mxu0 %v1643_v8  ;;  %846 = vmatpush1.bf16.msra.mxu1 %v1664_v17  ;;  %v1691_v41 = vld [vmem:[#allocation8 + $0xb0] ss:$8 sps:$4 sm:$0xff]   ;;  %v1692_v42 = vld [vmem:[#allocation8 + $0xc4] ss:$8 sps:$4 sm:$0xff]   ;;  %v1694_v43 = vld [vmem:[#allocation8 + $0xc0] ss:$8 sps:$4 sm:$0xff]  }
  0xbc   : > { %542 = vmatprep.subr.bf16.mxu0 %v1644_v9  ;;  %847 = vmatprep.subr.bf16.mxu1 %v1665_v24  ;;  %v1695_v44 = vld [vmem:[#allocation8 + $0xd4] ss:$8 sps:$4 sm:$0xff]   ;;  %v1697_v45 = vld [vmem:[#allocation8 + $0xd0] ss:$8 sps:$4 sm:$0xff]   ;;  %v1698_v46 = vld [vmem:[#allocation8 + $0xe4] ss:$8 sps:$4 sm:$0xff]  }
  0xbd   : > { %v1700_v47 = vld [vmem:[#allocation8 + $0xe0] ss:$8 sps:$4 sm:$0xff]   ;;  %v1701_v48 = vld [vmem:[#allocation8 + $0xf4] ss:$8 sps:$4 sm:$0xff]   ;;  %v1703_v49 = vld [vmem:[#allocation8 + $0xf0] ss:$8 sps:$4 sm:$0xff]  }
  0xbe   : > { %v2296_v51 = vshrl.u32 %v444_v50, 7  ;;  %v442_v53 = vld [vmem:[%s2376_s2] sm:$0x3]  ;;  %s1388_s18 = sshll.u32 %s2277_s3, 3  ;;  %s2415_s25 = sld [smem:[#allocation19_spill]] }
  0xbf   : > { %543 = vmatpush1.bf16.msra.mxu0 %v1646_v12  ;;  %848 = vmatpush1.bf16.msra.mxu1 %v1667_v25  ;;  %s1468_s27 = sshll.u32 %s1962_s12, 7  ;;  %s419_s23 = scalar_lea.vmem [#allocation12], %s1388_s18 }
  0xc0   : > { %544 = vmatprep.subr.bf16.mxu0 %v1647_v14  ;;  %849 = vmatprep.subr.bf16.mxu1 %v1668_v26  ;;  %v446_v52 = vsub.s32 0, %v2296_v51  ;;  %v450_v54 = vsub.s32 1, %v2296_v51  ;;  %s1255_s15 = sshll.u32 %s419_s23, 4  ;;  %s2416_s17 = sld [smem:[#allocation20_spill]]  ;;  %s2327_s15 = int_to_ptr.vmem [resolvable:$true] %s1255_s15 }
  0xc1   : > { %s1241_s24 = scalar_lea.sflag [#allocation5], %s2277_s3  ;;  %s1880_s12 = scalar_lea.vmem %s2327_s15, 128 }
  0xc2   : > { %v447_v55 = vrot.slane %v442_v53, %v446_v52  ;;  %v451_v56 = vrot.slane %v442_v53, %v450_v54  ;;  %p1881_p2 = scmp.ne.s32.totalorder %s2327_s15, %s1880_s12  ;;  %p2417_p9 = scmp.ne.s32.totalorder %s2410_s21, 0 }
  0xc3   : > { %545 = vmatpush1.bf16.msra.mxu0 %v1649_v18  ;;  %850 = vmatpush1.bf16.msra.mxu1 %v1670_v27  ;;  %s1984_s26 = smov [#allocation12]  }
  0xc4   : > { %546 = vmatprep.subr.bf16.mxu0 %v1650_v19  ;;  %851 = vmatprep.subr.bf16.mxu1 %v1671_v28  ;;  %p1882_p10 = pnand %p1881_p2, %p2417_p9  ;;  %s1884_s8 = sshll.u32 %s1984_s26, 4  ;;  %s1885_s8 = int_to_ptr.vmem [resolvable:$false] %s1884_s8 }
  0xc5   : > { %s1886_s18 = scalar_lea.vmem %s1885_s8, 256  ;;  %p1887_p0 = scmp.lt.s32.totalorder %s2327_s15, %s1885_s8 }
  0xc6   : > { %s2325_s29 = scalar_lea.hbm %s2416_s17, %s1468_s27  ;;  %p1883_p11 = pneg %p1882_p10 }
  0xc7   : > { %547 = vmatpush1.bf16.msra.mxu0 %v1652_v20  ;;  %852 = vmatpush1.bf16.msra.mxu1 %v1673_v29  ;;  %p1888_p7 = scmp.lt.s32.totalorder %s1886_s18, %s1880_s12 }
  0xc8   : > { %548 = vmatprep.subr.bf16.mxu0 %v1653_v21  ;;  %853 = vmatprep.subr.bf16.mxu1 %v1674_v30 }
  0xc9   : > { %p1889_p5 = por %p1888_p7, %p1887_p0 }
  0xcb   : > { %549 = vmatpush1.bf16.msra.mxu0 %v1655_v22  ;;  %854 = vmatpush1.bf16.msra.mxu1 %v1676_v31  ;;  %p1890_p8 = pnand %p1889_p5, %p1883_p11 }
  0xcc   : > { %855 = vmatprep.subr.bf16.mxu1 %v1677_v32 }
  0xce   : > { %567 = vmatmul.mubr.bf16.vlgmr.msra.gmra.mrb[0].mxu0 %v425_v23 }
  0xcf   : > { %856 = vmatpush1.bf16.msra.mxu1 %v1679_v33 }
  0xd0   : > { %857 = vmatprep.subr.bf16.mxu1 %v1680_v34 }
  0xd3   : > { %858 = vmatpush1.bf16.msra.mxu1 %v1682_v35 }
  0xd4   : > { %859 = vmatprep.subr.bf16.mxu1 %v1683_v36 }
  0xd7   : > { %860 = vmatpush1.bf16.msra.mxu1 %v1685_v37 }
  0xd8   : > { %861 = vmatprep.subr.bf16.mxu1 %v1686_v38 }
  0xdb   : > { %862 = vmatpush1.bf16.msra.mxu1 %v1688_v39 }
  0xdc   : > { %863 = vmatprep.subr.bf16.mxu1 %v1689_v40 }
  0xdf   : > { %864 = vmatpush1.bf16.msra.mxu1 %v1691_v41 }
  0xe0   : > { %865 = vmatprep.subr.bf16.mxu1 %v1692_v42 }
  0xe3   : > { %866 = vmatpush1.bf16.msra.mxu1 %v1694_v43 }
  0xe4   : > { %867 = vmatprep.subr.bf16.mxu1 %v1695_v44 }
  0xe7   : > { %868 = vmatpush1.bf16.msra.mxu1 %v1697_v45 }
  0xe8   : > { %869 = vmatprep.subr.bf16.mxu1 %v1698_v46 }
  0xeb   : > { %870 = vmatpush1.bf16.msra.mxu1 %v1700_v47 }
  0xec   : > { %871 = vmatprep.subr.bf16.mxu1 %v1701_v48 }
  0xef   : > { %872 = vmatpush1.bf16.msra.mxu1 %v1703_v49 }
 0x1a1   : > { %v568_v57 = vpop.f32.mrb[0].mxu0 }
 0x1a2   : > { %v569_v58 = vadd.f32 %v568_v57, %v447_v55  ;;  %v570_v59 = vpop.f32.mrb[1].mxu0 }
 0x1a3   : > { %v571_v60 = vadd.f32 %v570_v59, %v451_v56  ;;  %v572_v61 = vpop.f32.mrb[2].mxu0 }
 0x1a4   : > { %v577_v62 = vmul.f32 0.70710677, %v569_v58  ;;  %v573_v63 = vpop.f32.mrb[3].mxu0  ;;  %v575_v53 = vmul.f32 0.5, %v569_v58  ;;  %v1710_v58 = vld [vmem:[#allocation9 + $0x58] sm:$0xff]  }
 0x1a5   : > { %v578_v0 = vmul.f32 0.70710677, %v571_v60  ;;  %v576_v56 = vmul.f32 0.5, %v571_v60  ;;  %v1711_v60 = vld [vmem:[#allocation9 + $0x18] sm:$0xff]  }
 0x1a6   : > { %v1405_v1 = vclamps-f32 %v577_v62, 3.832507 }
 0x1a7   : > { %v1406_v2 = vclamps-f32 %v578_v0, 3.832507  ;;  %v1704_v0 = vld [vmem:[#allocation9 + $0x40] sm:$0xff]  }
 0x1a8   : > { %v583_v3 = vmul.f32 %v1405_v1, %v1405_v1  ;;  %1471 = vmatprep.subr.bf16.mxu0 %v1704_v0 }
 0x1a9   : > { %v584_v4 = vmul.f32 %v1406_v2, %v1406_v2 }
 0x1aa   : > { %v601_v5 = vmul.f32 -1.1791603e-07, %v583_v3  ;;  %v585_v6 = vmul.f32 0.00022905065, %v583_v3 }
 0x1ab   : > { %v602_v7 = vmul.f32 -1.1791603e-07, %v584_v4  ;;  %v586_v8 = vmul.f32 0.00022905065, %v584_v4 }
 0x1ac   : > { %v603_v9 = vadd.f32 2.3547966e-05, %v601_v5  ;;  %v587_v12 = vadd.f32 0.003408291, %v585_v6  ;;  %v1709_v5 = vld [vmem:[#allocation9 + $0x10] sm:$0xff]   ;;  %v1712_v6 = vld [vmem:[#allocation9 + $0x60] sm:$0xff]  }
 0x1ad   : > { %v604_v10 = vadd.f32 2.3547966e-05, %v602_v7  ;;  %v588_v14 = vadd.f32 0.003408291, %v586_v8  ;;  %v1713_v7 = vld [vmem:[#allocation9 + $0x20] sm:$0xff]   ;;  %v1714_v8 = vld [vmem:[#allocation9 + $0x68] sm:$0xff]  }
 0x1ae   : > { %v605_v11 = vmul.f32 %v603_v9, %v583_v3  ;;  %v589_v18 = vmul.f32 %v587_v12, %v583_v3  ;;  %v1715_v9 = vld [vmem:[#allocation9 + $0x28] sm:$0xff]   ;;  %v1718_v12 = vld [vmem:[#allocation9 + $0x78] sm:$0xff]  }
 0x1af   : > { %v606_v13 = vmul.f32 %v604_v10, %v584_v4  ;;  %v590_v20 = vmul.f32 %v588_v14, %v584_v4  ;;  %v1716_v10 = vld [vmem:[#allocation9 + $0x70] sm:$0xff]  }
 0x1b0   : > { %v607_v15 = vadd.f32 0.0010179626, %v605_v11  ;;  %v591_v24 = vadd.f32 0.050955694, %v589_v18  ;;  %v1717_v11 = vld [vmem:[#allocation9 + $0x30] sm:$0xff]  }
 0x1b1   : > { %v608_v16 = vadd.f32 0.0010179626, %v606_v13  ;;  %v592_v26 = vadd.f32 0.050955694, %v590_v20  ;;  %v1719_v13 = vld [vmem:[#allocation9 + $0x38] sm:$0xff]  }
 0x1b2   : > { %v609_v17 = vmul.f32 %v607_v15, %v583_v3  ;;  %v593_v30 = vmul.f32 %v591_v24, %v583_v3  ;;  %v669_v14 = vld [vmem:[%s2378_s4] sm:$0x3] }
 0x1b3   : > { %v610_v19 = vmul.f32 %v608_v16, %v584_v4  ;;  %v594_v32 = vmul.f32 %v592_v26, %v584_v4  ;;  %v674_v15 = vrot.slane %v669_v14, %v446_v52  ;;  %v678_v16 = vrot.slane %v669_v14, %v450_v54 }
 0x1b4   : > { %v611_v21 = vadd.f32 0.01407047, %v609_v17  ;;  %v595_v36 = vadd.f32 0.18520832, %v593_v30 }
 0x1b5   : > { %v612_v22 = vadd.f32 0.01407047, %v610_v19  ;;  %v596_v38 = vadd.f32 0.18520832, %v594_v32 }
 0x1b6   : > { %v613_v23 = vmul.f32 %v611_v21, %v583_v3  ;;  %v597_v41 = vmul.f32 %v595_v36, %v583_v3 }
 0x1b7   : > { %v614_v25 = vmul.f32 %v612_v22, %v584_v4  ;;  %v598_v42 = vmul.f32 %v596_v38, %v584_v4 }
 0x1b8   : > { %v615_v27 = vadd.f32 0.11098505, %v613_v23  ;;  %v599_v43 = vadd.f32 1.1283791, %v597_v41 }
 0x1b9   : > { %v616_v28 = vadd.f32 0.11098505, %v614_v25  ;;  %v600_v44 = vadd.f32 1.1283791, %v598_v42 }
 0x1ba   : > { %v617_v29 = vmul.f32 %v615_v27, %v583_v3  ;;  %v625_v45 = vmul.f32 %v1405_v1, %v599_v43  ;;  %v1706_v1 = vld [vmem:[#allocation9 + $0x48] sm:$0xff]  }
 0x1bb   : > { %v618_v31 = vmul.f32 %v616_v28, %v584_v4  ;;  %v626_v47 = vmul.f32 %v1406_v2, %v600_v44  ;;  %v1708_v2 = vld [vmem:[#allocation9 + $0x50] sm:$0xff]  }
 0x1bc   : > { %v619_v33 = vadd.f32 0.49746925, %v617_v29 }
 0x1bd   : > { %v620_v34 = vadd.f32 0.49746925, %v618_v31 }
 0x1be   : > { %v621_v35 = vmul.f32 %v619_v33, %v583_v3  ;;  %v1705_v3 = vld [vmem:[#allocation9] sm:$0xff]  }
 0x1bf   : > { %v622_v37 = vmul.f32 %v620_v34, %v584_v4  ;;  %1472 = vmatpush3.bf16.msra.mxu0 %v1705_v3  ;;  %v1707_v4 = vld [vmem:[#allocation9 + $0x8] sm:$0xff]  }
 0x1c0   : > { %v623_v39 = vadd.f32 1.0, %v621_v35  ;;  %1473 = vmatprep.subr.bf16.mxu0 %v1706_v1 }
 0x1c1   : > { %v624_v40 = vadd.f32 1.0, %v622_v37 }
 0x1c2   : > { %1728 = vrcp.f32 %v623_v39 }
 0x1c3   : > { %1730 = vrcp.f32 %v624_v40  ;;  %1474 = vmatpush3.bf16.msra.mxu0 %v1707_v4 }
 0x1c4   : > { %1475 = vmatprep.subr.bf16.mxu0 %v1708_v2 }
 0x1c7   : > { %1476 = vmatpush3.bf16.msra.mxu0 %v1709_v5 }
 0x1c8   : > { %1477 = vmatprep.subr.bf16.mxu0 %v1710_v58 }
 0x1cb   : > { %1478 = vmatpush3.bf16.msra.mxu0 %v1711_v60 }
 0x1cc   : > { %v1729_v46 = vpop.eup %1728  ;;  %1479 = vmatprep.subr.bf16.mxu0 %v1712_v6 }
 0x1cd   : > { %v1731_v48 = vpop.eup %1730  ;;  %v629_v49 = vmul.f32 %v1729_v46, %v625_v45 }
 0x1ce   : > { %v630_v50 = vmul.f32 %v1731_v48, %v626_v47 }
 0x1cf   : > { %v631_v55 = vadd.f32 1.0, %v629_v49  ;;  %1480 = vmatpush3.bf16.msra.mxu0 %v1713_v7 }
 0x1d0   : > { %v632_v57 = vadd.f32 1.0, %v630_v50  ;;  %1481 = vmatprep.subr.bf16.mxu0 %v1714_v8 }
 0x1d1   : > { %v633_v59 = vmul.f32 %v631_v55, %v575_v53 }
 0x1d2   : > { %v634_v61 = vmul.f32 %v632_v57, %v576_v56 }
 0x1d3   : > { %v635_v63 = vpack.c.bf16 %v633_v59, %v633_v59  ;;  %1482 = vmatpush3.bf16.msra.mxu0 %v1715_v9 }
 0x1d4   : > { %v636_v62 = vpack.c.bf16 %v634_v61, %v634_v61  ;;  %1483 = vmatprep.subr.bf16.mxu0 %v1716_v10 }
 0x1d6   : > { %873 = vmatprep.mubr.bf16.mxu1 %v636_v62 }
 0x1d7   : > { %874 = vmatmul.mubr.bf16.vlgmr.msra.gmra.mrb[0].mxu1 %v635_v63  ;;  %1484 = vmatpush3.bf16.msra.mxu0 %v1717_v11 }
 0x1d8   : > { %1485 = vmatprep.subr.bf16.mxu0 %v1718_v12 }
 0x1db   : > { %1486 = vmatpush3.bf16.msra.mxu0 %v1719_v13 }
 0x2aa   : > { %v875_v17 = vpop.f32.mrb[0].mxu1 }
 0x2ab   : > { %v876_v18 = vadd.f32 %v875_v17, %v674_v15  ;;  %v877_v19 = vpop.f32.mrb[1].mxu1 }
 0x2ac   : > { %v878_v20 = vadd.f32 %v877_v19, %v678_v16  ;;  %v879_v21 = vpop.f32.mrb[2].mxu1 }
 0x2ad   : > { %v884_v22 = vmul.f32 0.70710677, %v876_v18  ;;  %v880_v23 = vpop.f32.mrb[3].mxu1  ;;  %v882_v11 = vmul.f32 0.5, %v876_v18  ;;  %v1720_v21 = vld [vmem:[#allocation11] sm:$0xff]  }
 0x2ae   : > { %v885_v24 = vmul.f32 0.70710677, %v878_v20  ;;  %v883_v13 = vmul.f32 0.5, %v878_v20  ;;  %v1721_v23 = vld [vmem:[#allocation11 + $0x8] sm:$0xff]   ;;  %v1441_v18 = vld [vmem:[%s2380_s6] ss:$0 sm:$0xff] }
 0x2af   : > { %v1439_v25 = vclamps-f32 %v884_v22, 3.832507  ;;  %v1982_v22 = vmov 0.0  }
 0x2b0   : > { %v1440_v26 = vclamps-f32 %v885_v24, 3.832507  ;;  %1502 = vmatprep.subr.bf16.mxu0 %v1982_v22 }
 0x2b1   : > { %v890_v27 = vmul.f32 %v1439_v25, %v1439_v25 }
 0x2b2   : > { %v891_v28 = vmul.f32 %v1440_v26, %v1440_v26 }
 0x2b3   : > { %v908_v29 = vmul.f32 -1.1791603e-07, %v890_v27  ;;  %v892_v30 = vmul.f32 0.00022905065, %v890_v27 }
 0x2b4   : > { %v909_v31 = vmul.f32 -1.1791603e-07, %v891_v28  ;;  %v893_v52 = vmul.f32 0.00022905065, %v891_v28 }
 0x2b5   : > { %v910_v32 = vadd.f32 2.3547966e-05, %v908_v29  ;;  %v894_v54 = vadd.f32 0.003408291, %v892_v30  ;;  %v1722_v30 = vld [vmem:[#allocation11 + $0x10] sm:$0xff]  }
 0x2b6   : > { %v911_v33 = vadd.f32 2.3547966e-05, %v909_v31  ;;  %v895_v36 = vadd.f32 0.003408291, %v893_v52  ;;  %v1723_v31 = vld [vmem:[#allocation11 + $0x18] sm:$0xff]   ;;  %v1725_v52 = vld [vmem:[#allocation11 + $0x28] sm:$0xff]  }
 0x2b7   : > { %v912_v51 = vmul.f32 %v910_v32, %v890_v27  ;;  %v896_v39 = vmul.f32 %v894_v54, %v890_v27  ;;  %v1724_v32 = vld [vmem:[#allocation11 + $0x20] sm:$0xff]  }
 0x2b8   : > { %v913_v34 = vmul.f32 %v911_v33, %v891_v28  ;;  %v897_v42 = vmul.f32 %v895_v36, %v891_v28  ;;  %v1726_v33 = vld [vmem:[#allocation11 + $0x30] sm:$0xff]  }
 0x2b9   : > { %v914_v35 = vadd.f32 0.0010179626, %v912_v51  ;;  %v898_v45 = vadd.f32 0.050955694, %v896_v39  ;;  %v1727_v51 = vld [vmem:[#allocation11 + $0x38] sm:$0xff]  }
 0x2ba   : > { %v915_v37 = vadd.f32 0.0010179626, %v913_v34  ;;  %v899_v48 = vadd.f32 0.050955694, %v897_v42  ;;  %v1458_v39 = vld [vmem:[%s2415_s25] ss:$0 sm:$0xff] }
 0x2bb   : > { %v916_v38 = vmul.f32 %v914_v35, %v890_v27  ;;  %v900_v53 = vmul.f32 %v898_v45, %v890_v27 }
 0x2bc   : > { %v917_v40 = vmul.f32 %v915_v37, %v891_v28  ;;  %v901_v57 = vmul.f32 %v899_v48, %v891_v28 }
 0x2bd   : > { %v918_v41 = vadd.f32 0.01407047, %v916_v38  ;;  %v902_v62 = vadd.f32 0.18520832, %v900_v53 }
 0x2be   : > { %v919_v43 = vadd.f32 0.01407047, %v917_v40  ;;  %v903_v3 = vadd.f32 0.18520832, %v901_v57 }
 0x2bf   : > { %v920_v44 = vmul.f32 %v918_v41, %v890_v27  ;;  %v904_v4 = vmul.f32 %v902_v62, %v890_v27 }
 0x2c0   : > { %v921_v46 = vmul.f32 %v919_v43, %v891_v28  ;;  %v905_v2 = vmul.f32 %v903_v3, %v891_v28 }
 0x2c1   : > { %v922_v47 = vadd.f32 0.11098505, %v920_v44  ;;  %v906_v5 = vadd.f32 1.1283791, %v904_v4 }
 0x2c2   : > { %v923_v49 = vadd.f32 0.11098505, %v921_v46  ;;  %v907_v58 = vadd.f32 1.1283791, %v905_v2 }
 0x2c3   : > { %v924_v50 = vmul.f32 %v922_v47, %v890_v27  ;;  %v932_v60 = vmul.f32 %v1439_v25, %v906_v5 }
 0x2c4   : > { %v925_v55 = vmul.f32 %v923_v49, %v891_v28  ;;  %v933_v7 = vmul.f32 %v1440_v26, %v907_v58 }
 0x2c5   : > { %v926_v56 = vadd.f32 0.49746925, %v924_v50 }
 0x2c6   : > { %v927_v59 = vadd.f32 0.49746925, %v925_v55 }
 0x2c7   : > { %v928_v61 = vmul.f32 %v926_v56, %v890_v27 }
 0x2c8   : > { %v929_v63 = vmul.f32 %v927_v59, %v891_v28 }
 0x2c9   : > { %v930_v0 = vadd.f32 1.0, %v928_v61 }
 0x2ca   : > { %v931_v1 = vadd.f32 1.0, %v929_v63 }
 0x2cb   : > { %1732 = vrcp.f32 %v930_v0 }
 0x2cc   : > { %1734 = vrcp.f32 %v931_v1 }
 0x2d5   : > { %v1733_v6 = vpop.eup %1732 }
 0x2d6   : > { %v1735_v8 = vpop.eup %1734  ;;  %v936_v9 = vmul.f32 %v1733_v6, %v932_v60 }
 0x2d7   : > { %v937_v10 = vmul.f32 %v1735_v8, %v933_v7 }
 0x2d8   : > { %v938_v12 = vadd.f32 1.0, %v936_v9 }
 0x2d9   : > { %v939_v14 = vadd.f32 1.0, %v937_v10 }
 0x2da   : > { %v940_v15 = vmul.f32 %v938_v12, %v882_v11 }
 0x2db   : > { %v941_v16 = vmul.f32 %v939_v14, %v883_v13 }
 0x2dc   : > { %v942_v19 = vpack.c.bf16 %v940_v15, %v940_v15 }
 0x2dd   : > { %v943_v17 = vpack.c.bf16 %v941_v16, %v941_v16 }
 0x2df   : > { %1111 = vmatprep.mubr.bf16.mxu0 %v943_v17 }
 0x2e0   : > { %1112 = vmatmul.mubr.bf16.vlgmr.msra.gmra.mrb[4].mxu0 %v942_v19 }
 0x2e1   : > { %1503 = vmatpush3.bf16.msra.mxu0 %v1720_v21  ;;  %1518 = vmatprep.mubr.msk.bf16.mxu0 %vm1983_vm0, %v1982_v22 }
 0x2e2   : > { %1504 = vmatprep.subr.bf16.mxu0 %v1982_v22 }
 0x2e5   : > { %1505 = vmatpush3.bf16.msra.mxu0 %v1721_v23 }
 0x2e6   : > { %1506 = vmatprep.subr.bf16.mxu0 %v1982_v22 }
 0x2e9   : > { %1507 = vmatpush3.bf16.msra.mxu0 %v1722_v30 }
 0x2ea   : > { %1508 = vmatprep.subr.bf16.mxu0 %v1982_v22 }
 0x2ed   : > { %1509 = vmatpush3.bf16.msra.mxu0 %v1723_v31 }
 0x2ee   : > { %1510 = vmatprep.subr.bf16.mxu0 %v1982_v22 }
 0x2f1   : > { %1511 = vmatpush3.bf16.msra.mxu0 %v1724_v32 }
 0x2f2   : > { %1512 = vmatprep.subr.bf16.mxu0 %v1982_v22 }
 0x2f5   : > { %1513 = vmatpush3.bf16.msra.mxu0 %v1725_v52 }
 0x2f6   : > { %1514 = vmatprep.subr.bf16.mxu0 %v1982_v22 }
 0x2f9   : > { %1515 = vmatpush3.bf16.msra.mxu0 %v1726_v33 }
 0x2fa   : > { %1516 = vmatprep.subr.bf16.mxu0 %v1982_v22 }
 0x2fd   : > { %1517 = vmatpush3.bf16.msra.mxu0 %v1727_v51 }
 0x3b3   : > { %v1487_v24 = vpop.f32.mrb[4].mxu0 }
 0x3b4   : > { %v1488_v25 = vpop.f32.mrb[5].mxu0 }
 0x3b5   : > { %v1489_v20 = vadd.f32 %v1488_v25, %v1487_v24  ;;  %v1490_v26 = vpop.f32.mrb[6].mxu0 }
 0x3b6   : > { %v1491_v27 = vpop.f32.mrb[7].mxu0 }
 0x3b7   : > { %v1114_v28 = vadd.f32 %v1489_v20, %v1441_v18 }
 0x3b9   : > { %v1119_v29 = vmul.f32 %v1114_v28, %v1114_v28 }
 0x3bb   : > { %1120 = vadd.xlane.f32.xlu0 %v1119_v29 }
 0x448   : > { %v1121_v54 = vpop.xlane.xlu0 %1120 }
 0x449   : > { %v1122_v34 = vmax.f32 %v1121_v54, 1e-24 }
 0x44b   : > { %1736 = vrsqrt.f32 %v1122_v34 }
 0x455   : > { %v1737_v35 = vpop.eup %1736 }
 0x456   : > { %v1124_v36 = vmul.f32 %v1737_v35, %v1114_v28 }
 0x458   : > { %v1125_v37 = vpack.c.bf16 %v1124_v36, %v1124_v36 }
 0x45a   : > { %1126 = vst [vmem:[#allocation2] sm:$0xf] %v1125_v37 }
 0x461   : > { %v1127_v38 = vld [vmem:[#allocation2] sm:$0xf] }
 0x462   : > { %1519 = vmatmul.mubr.bf16.vlgmr.msra.gmra.mrb[8].mxu0 %v1127_v38 }
 0x535   : > { %v1233_v40 = vpop.f32.mrb[8].mxu0 }
 0x536   : > { %v1234_v41 = vadd.f32 %v1458_v39, %v1233_v40  ;;  %v1520_v42 = vpop.f32.mrb[9].mxu0 }
 0x537   : > { %v1236_v43 = vpop.f32.mrb[10].mxu0 }
 0x538   : > { %1239 = vst [vmem:[%s419_s23] sm:$0xff] %v1234_v41  ;;  %v1521_v44 = vpop.f32.mrb[11].mxu0 }
 0x539   : > { %1893 = shalt.err (!%p1890_p8)
}
 0x53a   : > { %s1894_s3 = scalar_lea.hbm %s2325_s29, 128  ;;  %s1898_s25 = scalar_lea.hbm %s2416_s17, 256 }
 0x53b   : > { %p1895_p1 = scmp.ne.s32.totalorder %s2325_s29, %s1894_s3  ;;  %p1899_p13 = scmp.lt.u32.totalorder %s2325_s29, %s2416_s17 }
 0x53c   : > { %p1900_p12 = scmp.lt.u32.totalorder %s1898_s25, %s1894_s3  ;;  %p1902_p2 = scmp.lt.u32.totalorder %s1894_s3, %s2325_s29 }
 0x53d   : > { %p1896_p3 = pnand %p1895_p1, %p2417_p9 }
 0x53e   : > { %p1901_p4 = por %p1900_p12, %p1899_p13 }
 0x53f   : > { %p1897_p6 = pneg %p1896_p3 }
 0x540   : > { %p1903_p10 = por %p1902_p2, %p1901_p4 }
 0x542   : > { %p1904_p11 = pnand %p1903_p10, %p1897_p6 }
 0x544   : > { %1907 = shalt.err (!%p1904_p11)
}
 0x545   : > { %1540 = dma.vmem_to_hbm [thread:$0]  (%p2417_p9), %s2327_s15, 128, %s2325_s29, %s1241_s24  }
 0x546 PF: > { %s1267_s1 = sand.u32 1, %s1950_s30   ;;  %p2418_p0 = scmp.ne.s32.totalorder %s2411_s9, 0 }
 0x547   : > { %p2419_p7 = scmp.ge.s32.totalorder %s1970_s14, 2  ;;  %s1268_s16 = scalar_lea.sflag [#allocation5], %s1267_s1 }
 0x549   : > { %p1560_p5 = pnand %p2419_p7, %p2418_p0 }
 0x54b   : > { %1945 = dma.done.wait (!%p1560_p5), %s1268_s16, 128  }
 0x54c   : > { %1947 = vsyncadd (!%p1560_p5), %s1268_s16, 4294967168  ;;  %s27_s14 = sadd.s32 1, %s1970_s14   ;;  %s2420_s30 = smov %s1954_s10 }
 0x54d   : > { %p24_p8 = scmp.ge.s32.totalorder %s27_s14, 4   ;;  %s2421_s10 = smov %s1958_s11 }
 0x54e   : > { %s2422_s11 = smov %s2227_s19  ;;  %s2423_s12 = smov %s1966_s13 }
 0x54f   : > { %s2424_s13 = smov %s2426_s28  ;;  %26 = sbr.rel (!%p24_p8) target bundleno = 13 (0xd), region = 121 }
 0x556   :  { %1273 = vsyncpa [#allocation4], 1 }
 0x557   :  { %1275 = vsyncpa [#allocation4 + $0x1], 1 }
 0x558   :  { %1276 = vsyncpa [#allocation7], 1 }
 0x559   :  { %1277 = vsyncpa [#allocation10], 1 }
 0x55a   :  { %1278 = vsyncpa [#allocation5], 1 }
 0x55b   :  { %1280 = vsyncpa [#allocation5 + $0x1], 1 }

// kernel: tpu_custom_call.1
= control target key start
LH: loop header
LB: loop body
LE: loop exit
PB: predicated region body
PF: predicated region fallthrough
CT: control target
= control target key end

     0   :  { %s2374_s0 = inlined_call_operand.hbm [shape: bf16[16,128], index: 0, kind: input, shape index: {}]   ;;  %s2375_s1 = inlined_call_operand.hbm [shape: bf16[128,256], index: 1, kind: input, shape index: {}]   ;;  %s2376_s2 = inlined_call_operand.vmem [shape: f32[1,256], index: 2, kind: input, shape index: {}]   ;;  %s2377_s3 = inlined_call_operand.hbm [shape: bf16[256,256], index: 3, kind: input, shape index: {}]   ;;  %s2378_s4 = inlined_call_operand.vmem [shape: f32[1,256], index: 4, kind: input, shape index: {}]   ;;  %s2379_s5 = inlined_call_operand.hbm [shape: bf16[256,128], index: 5, kind: input, shape index: {}]   ;;  %s2380_s6 = inlined_call_operand.vmem [shape: f32[1,128], index: 6, kind: input, shape index: {}]   ;;  %s2381_s7 = inlined_call_operand.hbm [shape: bf16[128,128], index: 7, kind: input, shape index: {}]   ;;  %s2382_s8 = inlined_call_operand.vmem [shape: f32[1,128], index: 8, kind: input, shape index: {}]   ;;  %s2383_s9 = inlined_call_operand.hbm [shape: f32[16,128], index: 9, kind: output, shape index: {}]  }
   0x1   :  { %2393 = sst [smem:[#allocation17_spill]] %s2375_s1 }
   0x2   :  { %2394 = sst [smem:[#allocation18_spill]] %s2377_s3 }
   0x3   :  { %2395 = sst [smem:[#allocation19_spill]] %s2382_s8 }
   0x4   :  { %2396 = sst [smem:[#allocation20_spill]] %s2383_s9 }
   0x5   :  { %14 = vsyncpa [#allocation4], 0 }
   0x6   :  { %16 = vsyncpa [#allocation4 + $0x1], 0 }
   0x7   :  { %17 = vsyncpa [#allocation7], 0 }
   0x8   :  { %18 = vsyncpa [#allocation10], 0 }
   0x9   :  { %19 = vsyncpa [#allocation5], 0 }
   0xa   :  { %21 = vsyncpa [#allocation5 + $0x1], 0  ;;  %s2035_s30 = smov 0   ;;  %s2037_s10 = smov 0  }
   0xb   :  { %s2039_s11 = smov 0   ;;  %s2041_s12 = smov 0  }
   0xc   :  { %s2043_s13 = smov 0   ;;  %s2045_s14 = smov 0  }
   0xd LB: > { %s2384_s15 = sadd.s32 4294967295, %s1970_s14   ;;  %p1374_p0 = scmp.ge.s32.totalorder %s1970_s14, 1  ;;  %s1970_s14 = sphi %s2045_s14, %s27_s14   ;;  %s1966_s13 = sphi %s2043_s13, %s2424_s13   ;;  %s1962_s12 = sphi %s2041_s12, %s2423_s12   ;;  %s1958_s11 = sphi %s2039_s11, %s2422_s11   ;;  %s1954_s10 = sphi %s2037_s10, %s2421_s10   ;;  %s1950_s30 = sphi %s2035_s30, %s2420_s30  }
   0xe   : > { %p2069_p1 = scmp.eq.s32.totalorder %s2384_s15, 0  ;;  %p266_p2 = scmp.lt.s32.totalorder %s1970_s14, 3 }
   0xf   : > { %s1972_s18 = smov [#allocation6]   ;;  %s1973_s21 = smov [#allocation9]  }
  0x10   : > { %s2397_s16 = scalar_select %p2069_p1, 1, 0 }
  0x11   : > { %p2074_p3 = pnand %p1374_p0, %p266_p2  ;;  %s278_s19 = sshll.u32 %s1972_s18, 4  ;;  %s2078_s19 = int_to_ptr.vmem [resolvable:$true] %s278_s19 }
  0x12   : > { %s310_s22 = sshll.u32 %s1973_s21, 4  ;;  %s2400_s1 = sld [smem:[#allocation17_spill]]  ;;  %s2089_s22 = int_to_ptr.vmem [resolvable:$true] %s310_s22 }
  0x13   : > { %s2398_s17 = scalar_select %p2074_p3, 1, 0 }
  0x14   : > { %p1542_p4 = pneg %p2074_p3 }
  0x16   : > { %p2085_p6 = pnand %p1542_p4, %p2069_p1 }
  0x18   : > { %s1738_s25 = scalar_lea.hbm %s2400_s1, 2048  ;;  %p2099_p8 = pneg %p2085_p6 }
  0x19   : > { %p1739_p7 = scmp.ne.s32.totalorder %s2400_s1, %s1738_s25  ;;  %p1745_p11 = scmp.lt.u32.totalorder %s1738_s25, %s2400_s1 }
  0x1b   : > { %p1741_p9 = pnand %p2099_p8, %p1739_p7 }
  0x1d   : > { %p1742_p10 = pneg %p1741_p9 }
  0x1f   : > { %p1747_p12 = pnand %p1745_p11, %p1742_p10 }
  0x21   : > { %1750 = shalt.err (!%p1747_p12)
}
  0x22   : > { %s1751_s21 = scalar_lea.vmem %s2078_s19, 2048  ;;  %p1759_p4 = scmp.lt.s32.totalorder %s2078_s19, %s2078_s19 }
  0x23   : > { %p1752_p13 = scmp.ne.s32.totalorder %s2078_s19, %s1751_s21  ;;  %p1760_p5 = scmp.lt.s32.totalorder %s1751_s21, %s1751_s21 }
  0x25   : > { %p1754_p0 = pnand %p1752_p13, %p2099_p8  ;;  %p1761_p7 = por %p1760_p5, %p1759_p4 }
  0x27   : > { %p1755_p2 = pneg %p1754_p0 }
  0x29   : > { %p1762_p9 = pnand %p1761_p7, %p1755_p2 }
  0x2b   : > { %1765 = shalt.err (!%p1762_p9)
}
  0x2c   : > { %s2386_s23 = smov 128   ;;  %s2387_s24 = smov 8  }
  0x2d   : > { %1545 = dma.hbm_to_vmem [thread:$0]  (!%p2085_p6), %s2400_s1, 2048, %s2078_s19, [#allocation7], %s2386_s23, %s2386_s23, %s2387_s24  }
  0x2e   : > { %s1766_s18 = scalar_lea.hbm %s2379_s5, 2048 }
  0x2f   : > { %p1767_p5 = scmp.ne.s32.totalorder %s2379_s5, %s1766_s18  ;;  %p1773_p12 = scmp.lt.u32.totalorder %s1766_s18, %s2379_s5 }
  0x31   : > { %p1769_p10 = pnand %p1767_p5, %p2099_p8 }
  0x33   : > { %p1770_p11 = pneg %p1769_p10 }
  0x35   : > { %p1775_p13 = pnand %p1773_p12, %p1770_p11 }
  0x37   : > { %1778 = shalt.err (!%p1775_p13)
}
  0x38   : > { %s1779_s19 = scalar_lea.vmem %s2089_s22, 2048  ;;  %p1787_p7 = scmp.lt.s32.totalorder %s2089_s22, %s2089_s22 }
  0x39   : > { %p1780_p0 = scmp.ne.s32.totalorder %s2089_s22, %s1779_s19  ;;  %p1788_p9 = scmp.lt.s32.totalorder %s1779_s19, %s1779_s19 }
  0x3b   : > { %p1782_p2 = pnand %p1780_p0, %p2099_p8  ;;  %p1789_p5 = por %p1788_p9, %p1787_p7 }
  0x3d   : > { %p1783_p4 = pneg %p1782_p2 }
  0x3f   : > { %p1790_p10 = pnand %p1789_p5, %p1783_p4 }
  0x41   : > { %1793 = shalt.err (!%p1790_p10)
}
  0x42   : > { %s2391_s15 = smov 64   ;;  %s1977_s8 = smov 4  }
  0x43   : > { %1551 = dma.hbm_to_vmem [thread:$0]  (!%p2085_p6), %s2379_s5, 2048, %s2089_s22, [#allocation10], %s2391_s15, %s2391_s15, %s1977_s8  }
  0x44   : > { %s1978_s26 = smov [#allocation8]   ;;  %s1979_s29 = smov [#allocation11]  }
  0x45   : > { %s294_s27 = sshll.u32 %s1978_s26, 4  ;;  %s326_s18 = sshll.u32 %s1979_s29, 4  ;;  %s295_s27 = int_to_ptr.vmem [resolvable:$true] %s294_s27  ;;  %s2149_s18 = int_to_ptr.vmem [resolvable:$true] %s326_s18 }
  0x46   : > { %s2402_s3 = sld [smem:[#allocation18_spill]] }
  0x4c   : > { %s1794_s23 = scalar_lea.hbm %s2402_s3, 4096 }
  0x4d   : > { %p1795_p11 = scmp.ne.s32.totalorder %s2402_s3, %s1794_s23  ;;  %p1801_p0 = scmp.lt.u32.totalorder %s1794_s23, %s2402_s3 }
  0x4f   : > { %p1797_p12 = pnand %p1795_p11, %p2099_p8 }
  0x51   : > { %p1798_p13 = pneg %p1797_p12 }
  0x53   : > { %p1803_p2 = pnand %p1801_p0, %p1798_p13 }
  0x55   : > { %1806 = shalt.err (!%p1803_p2)
}
  0x56   : > { %s1807_s25 = scalar_lea.vmem %s295_s27, 4096  ;;  %p1815_p5 = scmp.lt.s32.totalorder %s295_s27, %s295_s27 }
  0x57   : > { %p1808_p4 = scmp.ne.s32.totalorder %s295_s27, %s1807_s25  ;;  %p1816_p10 = scmp.lt.s32.totalorder %s1807_s25, %s1807_s25 }
  0x59   : > { %p1810_p7 = pnand %p1808_p4, %p2099_p8  ;;  %p1817_p3 = por %p1816_p10, %p1815_p5 }
  0x5b   : > { %p1811_p9 = pneg %p1810_p7 }
  0x5d   : > { %p1818_p1 = pnand %p1817_p3, %p1811_p9 }
  0x5f   : > { %1821 = shalt.err (!%p1818_p1)
}
  0x60   : > { %s2403_s1 = smov 8   ;;  %s2404_s24 = smov 128  }
  0x61   : > { %1548 = dma.hbm_to_vmem [thread:$0]  (!%p2085_p6), %s2402_s3, 4096, %s295_s27, [#allocation7], %s2404_s24, %s2404_s24, %s2403_s1  }
  0x62   : > { %s1822_s19 = scalar_lea.hbm %s2381_s7, 1024 }
  0x63   : > { %p1823_p11 = scmp.ne.s32.totalorder %s2381_s7, %s1822_s19  ;;  %p1829_p12 = scmp.lt.u32.totalorder %s1822_s19, %s2381_s7 }
  0x65   : > { %p1825_p1 = pnand %p1823_p11, %p2099_p8 }
  0x67   : > { %p1826_p3 = pneg %p1825_p1 }
  0x69   : > { %p1831_p13 = pnand %p1829_p12, %p1826_p3 }
  0x6b   : > { %1834 = shalt.err (!%p1831_p13)
}
  0x6c   : > { %s1835_s27 = scalar_lea.vmem %s2149_s18, 1024  ;;  %p1843_p7 = scmp.lt.s32.totalorder %s2149_s18, %s2149_s18 }
  0x6d   : > { %p1836_p0 = scmp.ne.s32.totalorder %s2149_s18, %s1835_s27  ;;  %p1844_p9 = scmp.lt.s32.totalorder %s1835_s27, %s1835_s27 }
  0x6f   : > { %p1838_p2 = pnand %p1836_p0, %p2099_p8  ;;  %p1845_p5 = por %p1844_p9, %p1843_p7 }
  0x71   : > { %p1839_p4 = pneg %p1838_p2 }
  0x73   : > { %p1846_p10 = pnand %p1845_p5, %p1839_p4 }
  0x75   : > { %1849 = shalt.err (!%p1846_p10)
}
  0x76   : > { %s2405_s15 = smov 64   ;;  %s1373_s20 = sadd.s32 4294967294, %s1970_s14  }
  0x77   : > { %1554 = dma.hbm_to_vmem [thread:$0]  (!%p2085_p6), %s2381_s7, 1024, %s2149_s18, [#allocation10], %s2405_s15, %s2405_s15, %s1977_s8  }
  0x78   : > { %s39_s28 = sadd.s32 1, %s1966_s13  ;;  %s46_s26 = sadd.s32 1, %s1958_s11 }
  0x79   : > { %p41_p8 = scmp.ge.s32.totalorder %s39_s28, 2  ;;  %p53_p11 = scmp.ne.s32.totalorder %s1958_s11, %s1954_s10 }
  0x7a   : > { %p54_p1 = scmp.eq.s32.totalorder %s1970_s14, 0  ;;  %p59_p12 = scmp.ne.s32.totalorder %s1954_s10, %s1950_s30 }
  0x7b   : > { %s2426_s28 = smov (%p41_p8, %s39_s28), 0  ;;  %s2407_s18 = sadd.s32 4294967295, %s1970_s14  }
  0x7c   : > { %p2206_p3 = por %p54_p1, %p53_p11  ;;  %s43_s8 = ssub.s32 %s1966_s13, %s2426_s28 }
  0x7d   : > { %p253_p6 = scmp.eq.s32.totalorder %s2407_s18, 1  ;;  %p44_p13 = scmp.eq.s32.totalorder %s43_s8, 0 }
  0x7e   : > { %p2408_p0 = scmp.ne.s32.totalorder %s2397_s16, 0  ;;  %p259_p7 = scmp.eq.s32.totalorder %s1373_s20, 1 }
  0x7f   : > { %p2222_p4 = por %p253_p6, %p53_p11  ;;  %p1567_p5 = scmp.lt.s32.totalorder %s1970_s14, 2 }
  0x80   : > { %p2218_p2 = por %p2408_p0, %p59_p12  ;;  %p2229_p9 = por %p259_p7, %p59_p12 }
  0x81   : > { %s2410_s21 = scalar_select %p2222_p4, 1, 0 }
  0x82   : > { %s2227_s19 = scalar_select %p44_p13, %s1958_s11, %s46_s26  }
  0x83   : > { %s2411_s9 = scalar_select %p2229_p9, 1, 0 }
  0x84   : > { %s343_s22 = sand.u32 1, %s1958_s11   ;;  %s1381_s25 = sshll.u32 %s1966_s13, 6 }
  0x85   : > { %s1380_s27 = sshll.u32 %s343_s22, 2  ;;  %s2239_s24 = scalar_lea.hbm %s2374_s0, %s1381_s25 }
  0x86   : > { %s347_s20 = scalar_lea.vmem [#allocation3], %s1380_s27  ;;  %p2243_p10 = pnand %p1567_p5, %p2206_p3 }
  0x87   : > { %s354_s26 = sshll.u32 %s347_s20, 4  ;;  %s344_s18 = scalar_lea.sflag [#allocation4], %s343_s22  ;;  %s2247_s26 = int_to_ptr.vmem [resolvable:$true] %s354_s26 }
  0x88   : > { %s1850_s3 = scalar_lea.hbm %s2239_s24, 64  ;;  %p1852_p11 = pneg %p2243_p10 }
  0x89   : > { %p1851_p8 = scmp.ne.s32.totalorder %s2239_s24, %s1850_s3  ;;  %s1855_s23 = scalar_lea.hbm %s2374_s0, 128 }
  0x8a   : > { %p1856_p3 = scmp.lt.u32.totalorder %s2239_s24, %s2374_s0  ;;  %p1857_p6 = scmp.lt.u32.totalorder %s1855_s23, %s1850_s3 }
  0x8b   : > { %p1853_p1 = pnand %p1852_p11, %p1851_p8  ;;  %p1859_p0 = scmp.lt.u32.totalorder %s1850_s3, %s2239_s24 }
  0x8c   : > { %p1858_p13 = por %p1857_p6, %p1856_p3 }
  0x8d   : > { %p1854_p12 = pneg %p1853_p1 }
  0x8e   : > { %p1860_p7 = por %p1859_p0, %p1858_p13 }
  0x90   : > { %p1861_p5 = pnand %p1860_p7, %p1854_p12 }
  0x92   : > { %1864 = shalt.err (!%p1861_p5)
}
  0x93   : > { %s1865_s22 = scalar_lea.vmem %s2247_s26, 64  ;;  %s1980_s20 = smov [#allocation3]  }
  0x94   : > { %p1866_p8 = scmp.ne.s32.totalorder %s2247_s26, %s1865_s22  ;;  %s1870_s25 = sshll.u32 %s1980_s20, 4  ;;  %s1871_s25 = int_to_ptr.vmem [resolvable:$false] %s1870_s25 }
  0x95   : > { %s1872_s27 = scalar_lea.vmem %s1871_s25, 128  ;;  %p1873_p4 = scmp.lt.s32.totalorder %s2247_s26, %s1871_s25 }
  0x96   : > { %p1868_p1 = pnand %p1866_p8, %p1852_p11  ;;  %p1874_p3 = scmp.lt.s32.totalorder %s1872_s27, %s1865_s22 }
  0x98   : > { %p1869_p9 = pneg %p1868_p1  ;;  %p1875_p6 = por %p1874_p3, %p1873_p4 }
  0x9a   : > { %p1876_p13 = pnand %p1875_p6, %p1869_p9 }
  0x9c   : > { %1879 = shalt.err (!%p1876_p13)
}
  0x9d   : > { %1558 = dma.hbm_to_vmem [thread:$0]  (!%p2243_p10), %s2239_s24, 64, %s2247_s26, %s344_s18  }
  0x9e   : > { %p2413_p12 = scmp.ne.s32.totalorder %s2398_s17, 0 }
  0x9f   : > { %s2277_s3 = sand.u32 (!%p2413_p12), 1, %s1954_s10  }
  0xa0   : > { %363 = sbr.rel (%p2413_p12) target bundleno = 1350 (0x546), region = 56  ;;  %s1383_s23 = sshll.u32 (!%p2413_p12), %s2277_s3, 2 }
  0xa1   : > { %s366_s15 = scalar_lea.sflag (!%p2413_p12), [#allocation4], %s2277_s3  ;;  %s2281_s1 = scalar_lea.vmem (!%p2413_p12), [#allocation3], %s1383_s23 }
  0xa7   : > { %1933 = dma.done.wait (%p2218_p2), %s366_s15, 64  }
  0xa8   : > { %1935 = vsyncadd (%p2218_p2), %s366_s15, 4294967232  ;;  %p2414_p4 = scmp.ne.s32.totalorder %s2397_s16, 0 }
  0xaa   : > { %1937 = dma.done.wait (%p2414_p4), [#allocation7], 6144  }
  0xab   : > { %1939 = vsyncadd (%p2414_p4), [#allocation7], 4294961152 }
  0xac   : > { %1941 = dma.done.wait (%p2414_p4), [#allocation10], 3072  }
  0xad   : > { %1943 = vsyncadd (%p2414_p4), [#allocation10], 4294964224  ;;  %v1981_v0 = vmov 0   ;;  %v1632_v1 = vld [vmem:[#allocation6 + $0x4] ss:$8 sps:$4 sm:$0xff]   ;;  %v444_v50 = vlaneseq  ;;  %vm1983_vm0 = vmmov 0  }
  0xae   : > { %566 = vmatprep.mubr.bf16.mxu0 %v1981_v0  ;;  %v1634_v2 = vld [vmem:[#allocation6] ss:$8 sps:$4 sm:$0xff]   ;;  %534 = vmatprep.subr.bf16.mxu0 %v1632_v1  ;;  %v1635_v3 = vld [vmem:[#allocation6 + $0x14] ss:$8 sps:$4 sm:$0xff]   ;;  %v1637_v4 = vld [vmem:[#allocation6 + $0x10] ss:$8 sps:$4 sm:$0xff]  }
  0xaf   : > { %535 = vmatpush1.bf16.msra.mxu0 %v1634_v2  ;;  %v1638_v5 = vld [vmem:[#allocation6 + $0x24] ss:$8 sps:$4 sm:$0xff]   ;;  %v1640_v6 = vld [vmem:[#allocation6 + $0x20] ss:$8 sps:$4 sm:$0xff]   ;;  %v1641_v7 = vld [vmem:[#allocation6 + $0x34] ss:$8 sps:$4 sm:$0xff]  }
  0xb0   : > { %536 = vmatprep.subr.bf16.mxu0 %v1635_v3  ;;  %v1643_v8 = vld [vmem:[#allocation6 + $0x30] ss:$8 sps:$4 sm:$0xff]   ;;  %v1644_v9 = vld [vmem:[#allocation6 + $0x44] ss:$8 sps:$4 sm:$0xff]   ;;  %v1658_v11 = vld [vmem:[#allocation8] ss:$8 sps:$4 sm:$0xff]  }
  0xb1   : > { %v1656_v10 = vld [vmem:[#allocation8 + $0x4] ss:$8 sps:$4 sm:$0xff]   ;;  %v1646_v12 = vld [vmem:[#allocation6 + $0x40] ss:$8 sps:$4 sm:$0xff]   ;;  %v1659_v13 = vld [vmem:[#allocation8 + $0x14] ss:$8 sps:$4 sm:$0xff]  }
  0xb2   : > { %841 = vmatprep.subr.bf16.mxu1 %v1656_v10  ;;  %v1647_v14 = vld [vmem:[#allocation6 + $0x54] ss:$8 sps:$4 sm:$0xff]   ;;  %v1661_v15 = vld [vmem:[#allocation8 + $0x10] ss:$8 sps:$4 sm:$0xff]   ;;  %v1662_v16 = vld [vmem:[#allocation8 + $0x24] ss:$8 sps:$4 sm:$0xff]  }
  0xb3   : > { %537 = vmatpush1.bf16.msra.mxu0 %v1637_v4  ;;  %842 = vmatpush1.bf16.msra.mxu1 %v1658_v11  ;;  %v1664_v17 = vld [vmem:[#allocation8 + $0x20] ss:$8 sps:$4 sm:$0xff]   ;;  %v1649_v18 = vld [vmem:[#allocation6 + $0x50] ss:$8 sps:$4 sm:$0xff]   ;;  %v1650_v19 = vld [vmem:[#allocation6 + $0x64] ss:$8 sps:$4 sm:$0xff]  }
  0xb4   : > { %538 = vmatprep.subr.bf16.mxu0 %v1638_v5  ;;  %843 = vmatprep.subr.bf16.mxu1 %v1659_v13  ;;  %v1652_v20 = vld [vmem:[#allocation6 + $0x60] ss:$8 sps:$4 sm:$0xff]   ;;  %v1653_v21 = vld [vmem:[#allocation6 + $0x74] ss:$8 sps:$4 sm:$0xff]   ;;  %v1655_v22 = vld [vmem:[#allocation6 + $0x70] ss:$8 sps:$4 sm:$0xff]  }
  0xb5   : > { %v425_v23 = vld [vmem:[%s2281_s1] sm:$0xf]  ;;  %v1668_v26 = vld [vmem:[#allocation8 + $0x44] ss:$8 sps:$4 sm:$0xff]   ;;  %v1670_v27 = vld [vmem:[#allocation8 + $0x40] ss:$8 sps:$4 sm:$0xff]  }
  0xb6   : > { %v1665_v24 = vld [vmem:[#allocation8 + $0x34] ss:$8 sps:$4 sm:$0xff]   ;;  %v1667_v25 = vld [vmem:[#allocation8 + $0x30] ss:$8 sps:$4 sm:$0xff]   ;;  %v1674_v30 = vld [vmem:[#allocation8 + $0x64] ss:$8 sps:$4 sm:$0xff]  }
  0xb7   : > { %539 = vmatpush1.bf16.msra.mxu0 %v1640_v6  ;;  %844 = vmatpush1.bf16.msra.mxu1 %v1661_v15  ;;  %v1671_v28 = vld [vmem:[#allocation8 + $0x54] ss:$8 sps:$4 sm:$0xff]   ;;  %v1673_v29 = vld [vmem:[#allocation8 + $0x50] ss:$8 sps:$4 sm:$0xff]   ;;  %v1676_v31 = vld [vmem:[#allocation8 + $0x60] ss:$8 sps:$4 sm:$0xff]  }
  0xb8   : > { %540 = vmatprep.subr.bf16.mxu0 %v1641_v7  ;;  %845 = vmatprep.subr.bf16.mxu1 %v1662_v16  ;;  %v1677_v32 = vld [vmem:[#allocation8 + $0x74] ss:$8 sps:$4 sm:$0xff]   ;;  %v1679_v33 = vld [vmem:[#allocation8 + $0x70] ss:$8 sps:$4 sm:$0xff]   ;;  %v1680_v34 = vld [vmem:[#allocation8 + $0x84] ss:$8 sps:$4 sm:$0xff]  }
  0xb9   : > { %v1682_v35 = vld [vmem:[#allocation8 + $0x80] ss:$8 sps:$4 sm:$0xff]   ;;  %v1683_v36 = vld [vmem:[#allocation8 + $0x94] ss:$8 sps:$4 sm:$0xff]   ;;  %v1685_v37 = vld [vmem:[#allocation8 + $0x90] ss:$8 sps:$4 sm:$0xff]  }
  0xba   : > { %v1686_v38 = vld [vmem:[#allocation8 + $0xa4] ss:$8 sps:$4 sm:$0xff]   ;;  %v1688_v39 = vld [vmem:[#allocation8 + $0xa0] ss:$8 sps:$4 sm:$0xff]   ;;  %v1689_v40 = vld [vmem:[#allocation8 + $0xb4] ss:$8 sps:$4 sm:$0xff]  }
  0xbb   : > { %541 = vmatpush1.bf16.msra.mxu0 %v1643_v8  ;;  %846 = vmatpush1.bf16.msra.mxu1 %v1664_v17  ;;  %v1691_v41 = vld [vmem:[#allocation8 + $0xb0] ss:$8 sps:$4 sm:$0xff]   ;;  %v1692_v42 = vld [vmem:[#allocation8 + $0xc4] ss:$8 sps:$4 sm:$0xff]   ;;  %v1694_v43 = vld [vmem:[#allocation8 + $0xc0] ss:$8 sps:$4 sm:$0xff]  }
  0xbc   : > { %542 = vmatprep.subr.bf16.mxu0 %v1644_v9  ;;  %847 = vmatprep.subr.bf16.mxu1 %v1665_v24  ;;  %v1695_v44 = vld [vmem:[#allocation8 + $0xd4] ss:$8 sps:$4 sm:$0xff]   ;;  %v1697_v45 = vld [vmem:[#allocation8 + $0xd0] ss:$8 sps:$4 sm:$0xff]   ;;  %v1698_v46 = vld [vmem:[#allocation8 + $0xe4] ss:$8 sps:$4 sm:$0xff]  }
  0xbd   : > { %v1700_v47 = vld [vmem:[#allocation8 + $0xe0] ss:$8 sps:$4 sm:$0xff]   ;;  %v1701_v48 = vld [vmem:[#allocation8 + $0xf4] ss:$8 sps:$4 sm:$0xff]   ;;  %v1703_v49 = vld [vmem:[#allocation8 + $0xf0] ss:$8 sps:$4 sm:$0xff]  }
  0xbe   : > { %v2296_v51 = vshrl.u32 %v444_v50, 7  ;;  %v442_v53 = vld [vmem:[%s2376_s2] sm:$0x3]  ;;  %s1388_s18 = sshll.u32 %s2277_s3, 3  ;;  %s2415_s25 = sld [smem:[#allocation19_spill]] }
  0xbf   : > { %543 = vmatpush1.bf16.msra.mxu0 %v1646_v12  ;;  %848 = vmatpush1.bf16.msra.mxu1 %v1667_v25  ;;  %s1468_s27 = sshll.u32 %s1962_s12, 7  ;;  %s419_s23 = scalar_lea.vmem [#allocation12], %s1388_s18 }
  0xc0   : > { %544 = vmatprep.subr.bf16.mxu0 %v1647_v14  ;;  %849 = vmatprep.subr.bf16.mxu1 %v1668_v26  ;;  %v446_v52 = vsub.s32 0, %v2296_v51  ;;  %v450_v54 = vsub.s32 1, %v2296_v51  ;;  %s1255_s15 = sshll.u32 %s419_s23, 4  ;;  %s2416_s17 = sld [smem:[#allocation20_spill]]  ;;  %s2327_s15 = int_to_ptr.vmem [resolvable:$true] %s1255_s15 }
  0xc1   : > { %s1241_s24 = scalar_lea.sflag [#allocation5], %s2277_s3  ;;  %s1880_s12 = scalar_lea.vmem %s2327_s15, 128 }
  0xc2   : > { %v447_v55 = vrot.slane %v442_v53, %v446_v52  ;;  %v451_v56 = vrot.slane %v442_v53, %v450_v54  ;;  %p1881_p2 = scmp.ne.s32.totalorder %s2327_s15, %s1880_s12  ;;  %p2417_p9 = scmp.ne.s32.totalorder %s2410_s21, 0 }
  0xc3   : > { %545 = vmatpush1.bf16.msra.mxu0 %v1649_v18  ;;  %850 = vmatpush1.bf16.msra.mxu1 %v1670_v27  ;;  %s1984_s26 = smov [#allocation12]  }
  0xc4   : > { %546 = vmatprep.subr.bf16.mxu0 %v1650_v19  ;;  %851 = vmatprep.subr.bf16.mxu1 %v1671_v28  ;;  %p1882_p10 = pnand %p1881_p2, %p2417_p9  ;;  %s1884_s8 = sshll.u32 %s1984_s26, 4  ;;  %s1885_s8 = int_to_ptr.vmem [resolvable:$false] %s1884_s8 }
  0xc5   : > { %s1886_s18 = scalar_lea.vmem %s1885_s8, 256  ;;  %p1887_p0 = scmp.lt.s32.totalorder %s2327_s15, %s1885_s8 }
  0xc6   : > { %s2325_s29 = scalar_lea.hbm %s2416_s17, %s1468_s27  ;;  %p1883_p11 = pneg %p1882_p10 }
  0xc7   : > { %547 = vmatpush1.bf16.msra.mxu0 %v1652_v20  ;;  %852 = vmatpush1.bf16.msra.mxu1 %v1673_v29  ;;  %p1888_p7 = scmp.lt.s32.totalorder %s1886_s18, %s1880_s12 }
  0xc8   : > { %548 = vmatprep.subr.bf16.mxu0 %v1653_v21  ;;  %853 = vmatprep.subr.bf16.mxu1 %v1674_v30 }
  0xc9   : > { %p1889_p5 = por %p1888_p7, %p1887_p0 }
  0xcb   : > { %549 = vmatpush1.bf16.msra.mxu0 %v1655_v22  ;;  %854 = vmatpush1.bf16.msra.mxu1 %v1676_v31  ;;  %p1890_p8 = pnand %p1889_p5, %p1883_p11 }
  0xcc   : > { %855 = vmatprep.subr.bf16.mxu1 %v1677_v32 }
  0xce   : > { %567 = vmatmul.mubr.bf16.vlgmr.msra.gmra.mrb[0].mxu0 %v425_v23 }
  0xcf   : > { %856 = vmatpush1.bf16.msra.mxu1 %v1679_v33 }
  0xd0   : > { %857 = vmatprep.subr.bf16.mxu1 %v1680_v34 }
  0xd3   : > { %858 = vmatpush1.bf16.msra.mxu1 %v1682_v35 }
  0xd4   : > { %859 = vmatprep.subr.bf16.mxu1 %v1683_v36 }
  0xd7   : > { %860 = vmatpush1.bf16.msra.mxu1 %v1685_v37 }
  0xd8   : > { %861 = vmatprep.subr.bf16.mxu1 %v1686_v38 }
  0xdb   : > { %862 = vmatpush1.bf16.msra.mxu1 %v1688_v39 }
  0xdc   : > { %863 = vmatprep.subr.bf16.mxu1 %v1689_v40 }
  0xdf   : > { %864 = vmatpush1.bf16.msra.mxu1 %v1691_v41 }
  0xe0   : > { %865 = vmatprep.subr.bf16.mxu1 %v1692_v42 }
  0xe3   : > { %866 = vmatpush1.bf16.msra.mxu1 %v1694_v43 }
  0xe4   : > { %867 = vmatprep.subr.bf16.mxu1 %v1695_v44 }
  0xe7   : > { %868 = vmatpush1.bf16.msra.mxu1 %v1697_v45 }
  0xe8   : > { %869 = vmatprep.subr.bf16.mxu1 %v1698_v46 }
  0xeb   : > { %870 = vmatpush1.bf16.msra.mxu1 %v1700_v47 }
  0xec   : > { %871 = vmatprep.subr.bf16.mxu1 %v1701_v48 }
  0xef   : > { %872 = vmatpush1.bf16.msra.mxu1 %v1703_v49 }
 0x1a1   : > { %v568_v57 = vpop.f32.mrb[0].mxu0 }
 0x1a2   : > { %v569_v58 = vadd.f32 %v568_v57, %v447_v55  ;;  %v570_v59 = vpop.f32.mrb[1].mxu0 }
 0x1a3   : > { %v571_v60 = vadd.f32 %v570_v59, %v451_v56  ;;  %v572_v61 = vpop.f32.mrb[2].mxu0 }
 0x1a4   : > { %v577_v62 = vmul.f32 0.70710677, %v569_v58  ;;  %v573_v63 = vpop.f32.mrb[3].mxu0  ;;  %v575_v53 = vmul.f32 0.5, %v569_v58  ;;  %v1710_v58 = vld [vmem:[#allocation9 + $0x58] sm:$0xff]  }
 0x1a5   : > { %v578_v0 = vmul.f32 0.70710677, %v571_v60  ;;  %v576_v56 = vmul.f32 0.5, %v571_v60  ;;  %v1711_v60 = vld [vmem:[#allocation9 + $0x18] sm:$0xff]  }
 0x1a6   : > { %v1405_v1 = vclamps-f32 %v577_v62, 3.832507 }
 0x1a7   : > { %v1406_v2 = vclamps-f32 %v578_v0, 3.832507  ;;  %v1704_v0 = vld [vmem:[#allocation9 + $0x40] sm:$0xff]  }
 0x1a8   : > { %v583_v3 = vmul.f32 %v1405_v1, %v1405_v1  ;;  %1471 = vmatprep.subr.bf16.mxu0 %v1704_v0 }
 0x1a9   : > { %v584_v4 = vmul.f32 %v1406_v2, %v1406_v2 }
 0x1aa   : > { %v601_v5 = vmul.f32 -1.1791603e-07, %v583_v3  ;;  %v585_v6 = vmul.f32 0.00022905065, %v583_v3 }
 0x1ab   : > { %v602_v7 = vmul.f32 -1.1791603e-07, %v584_v4  ;;  %v586_v8 = vmul.f32 0.00022905065, %v584_v4 }
 0x1ac   : > { %v603_v9 = vadd.f32 2.3547966e-05, %v601_v5  ;;  %v587_v12 = vadd.f32 0.003408291, %v585_v6  ;;  %v1709_v5 = vld [vmem:[#allocation9 + $0x10] sm:$0xff]   ;;  %v1712_v6 = vld [vmem:[#allocation9 + $0x60] sm:$0xff]  }
 0x1ad   : > { %v604_v10 = vadd.f32 2.3547966e-05, %v602_v7  ;;  %v588_v14 = vadd.f32 0.003408291, %v586_v8  ;;  %v1713_v7 = vld [vmem:[#allocation9 + $0x20] sm:$0xff]   ;;  %v1714_v8 = vld [vmem:[#allocation9 + $0x68] sm:$0xff]  }
 0x1ae   : > { %v605_v11 = vmul.f32 %v603_v9, %v583_v3  ;;  %v589_v18 = vmul.f32 %v587_v12, %v583_v3  ;;  %v1715_v9 = vld [vmem:[#allocation9 + $0x28] sm:$0xff]   ;;  %v1718_v12 = vld [vmem:[#allocation9 + $0x78] sm:$0xff]  }
 0x1af   : > { %v606_v13 = vmul.f32 %v604_v10, %v584_v4  ;;  %v590_v20 = vmul.f32 %v588_v14, %v584_v4  ;;  %v1716_v10 = vld [vmem:[#allocation9 + $0x70] sm:$0xff]  }
 0x1b0   : > { %v607_v15 = vadd.f32 0.0010179626, %v605_v11  ;;  %v591_v24 = vadd.f32 0.050955694, %v589_v18  ;;  %v1717_v11 = vld [vmem:[#allocation9 + $0x30] sm:$0xff]  }
 0x1b1   : > { %v608_v16 = vadd.f32 0.0010179626, %v606_v13  ;;  %v592_v26 = vadd.f32 0.050955694, %v590_v20  ;;  %v1719_v13 = vld [vmem:[#allocation9 + $0x38] sm:$0xff]  }
 0x1b2   : > { %v609_v17 = vmul.f32 %v607_v15, %v583_v3  ;;  %v593_v30 = vmul.f32 %v591_v24, %v583_v3  ;;  %v669_v14 = vld [vmem:[%s2378_s4] sm:$0x3] }
 0x1b3   : > { %v610_v19 = vmul.f32 %v608_v16, %v584_v4  ;;  %v594_v32 = vmul.f32 %v592_v26, %v584_v4  ;;  %v674_v15 = vrot.slane %v669_v14, %v446_v52  ;;  %v678_v16 = vrot.slane %v669_v14, %v450_v54 }
 0x1b4   : > { %v611_v21 = vadd.f32 0.01407047, %v609_v17  ;;  %v595_v36 = vadd.f32 0.18520832, %v593_v30 }
 0x1b5   : > { %v612_v22 = vadd.f32 0.01407047, %v610_v19  ;;  %v596_v38 = vadd.f32 0.18520832, %v594_v32 }
 0x1b6   : > { %v613_v23 = vmul.f32 %v611_v21, %v583_v3  ;;  %v597_v41 = vmul.f32 %v595_v36, %v583_v3 }
 0x1b7   : > { %v614_v25 = vmul.f32 %v612_v22, %v584_v4  ;;  %v598_v42 = vmul.f32 %v596_v38, %v584_v4 }
 0x1b8   : > { %v615_v27 = vadd.f32 0.11098505, %v613_v23  ;;  %v599_v43 = vadd.f32 1.1283791, %v597_v41 }
 0x1b9   : > { %v616_v28 = vadd.f32 0.11098505, %v614_v25  ;;  %v600_v44 = vadd.f32 1.1283791, %v598_v42 }
 0x1ba   : > { %v617_v29 = vmul.f32 %v615_v27, %v583_v3  ;;  %v625_v45 = vmul.f32 %v1405_v1, %v599_v43  ;;  %v1706_v1 = vld [vmem:[#allocation9 + $0x48] sm:$0xff]  }
 0x1bb   : > { %v618_v31 = vmul.f32 %v616_v28, %v584_v4  ;;  %v626_v47 = vmul.f32 %v1406_v2, %v600_v44  ;;  %v1708_v2 = vld [vmem:[#allocation9 + $0x50] sm:$0xff]  }
 0x1bc   : > { %v619_v33 = vadd.f32 0.49746925, %v617_v29 }
 0x1bd   : > { %v620_v34 = vadd.f32 0.49746925, %v618_v31 }
 0x1be   : > { %v621_v35 = vmul.f32 %v619_v33, %v583_v3  ;;  %v1705_v3 = vld [vmem:[#allocation9] sm:$0xff]  }
 0x1bf   : > { %v622_v37 = vmul.f32 %v620_v34, %v584_v4  ;;  %1472 = vmatpush3.bf16.msra.mxu0 %v1705_v3  ;;  %v1707_v4 = vld [vmem:[#allocation9 + $0x8] sm:$0xff]  }
 0x1c0   : > { %v623_v39 = vadd.f32 1.0, %v621_v35  ;;  %1473 = vmatprep.subr.bf16.mxu0 %v1706_v1 }
 0x1c1   : > { %v624_v40 = vadd.f32 1.0, %v622_v37 }
 0x1c2   : > { %1728 = vrcp.f32 %v623_v39 }
 0x1c3   : > { %1730 = vrcp.f32 %v624_v40  ;;  %1474 = vmatpush3.bf16.msra.mxu0 %v1707_v4 }
 0x1c4   : > { %1475 = vmatprep.subr.bf16.mxu0 %v1708_v2 }
 0x1c7   : > { %1476 = vmatpush3.bf16.msra.mxu0 %v1709_v5 }
 0x1c8   : > { %1477 = vmatprep.subr.bf16.mxu0 %v1710_v58 }
 0x1cb   : > { %1478 = vmatpush3.bf16.msra.mxu0 %v1711_v60 }
 0x1cc   : > { %v1729_v46 = vpop.eup %1728  ;;  %1479 = vmatprep.subr.bf16.mxu0 %v1712_v6 }
 0x1cd   : > { %v1731_v48 = vpop.eup %1730  ;;  %v629_v49 = vmul.f32 %v1729_v46, %v625_v45 }
 0x1ce   : > { %v630_v50 = vmul.f32 %v1731_v48, %v626_v47 }
 0x1cf   : > { %v631_v55 = vadd.f32 1.0, %v629_v49  ;;  %1480 = vmatpush3.bf16.msra.mxu0 %v1713_v7 }
 0x1d0   : > { %v632_v57 = vadd.f32 1.0, %v630_v50  ;;  %1481 = vmatprep.subr.bf16.mxu0 %v1714_v8 }
 0x1d1   : > { %v633_v59 = vmul.f32 %v631_v55, %v575_v53 }
 0x1d2   : > { %v634_v61 = vmul.f32 %v632_v57, %v576_v56 }
 0x1d3   : > { %v635_v63 = vpack.c.bf16 %v633_v59, %v633_v59  ;;  %1482 = vmatpush3.bf16.msra.mxu0 %v1715_v9 }
 0x1d4   : > { %v636_v62 = vpack.c.bf16 %v634_v61, %v634_v61  ;;  %1483 = vmatprep.subr.bf16.mxu0 %v1716_v10 }
 0x1d6   : > { %873 = vmatprep.mubr.bf16.mxu1 %v636_v62 }
 0x1d7   : > { %874 = vmatmul.mubr.bf16.vlgmr.msra.gmra.mrb[0].mxu1 %v635_v63  ;;  %1484 = vmatpush3.bf16.msra.mxu0 %v1717_v11 }
 0x1d8   : > { %1485 = vmatprep.subr.bf16.mxu0 %v1718_v12 }
 0x1db   : > { %1486 = vmatpush3.bf16.msra.mxu0 %v1719_v13 }
 0x2aa   : > { %v875_v17 = vpop.f32.mrb[0].mxu1 }
 0x2ab   : > { %v876_v18 = vadd.f32 %v875_v17, %v674_v15  ;;  %v877_v19 = vpop.f32.mrb[1].mxu1 }
 0x2ac   : > { %v878_v20 = vadd.f32 %v877_v19, %v678_v16  ;;  %v879_v21 = vpop.f32.mrb[2].mxu1 }
 0x2ad   : > { %v884_v22 = vmul.f32 0.70710677, %v876_v18  ;;  %v880_v23 = vpop.f32.mrb[3].mxu1  ;;  %v882_v11 = vmul.f32 0.5, %v876_v18  ;;  %v1720_v21 = vld [vmem:[#allocation11] sm:$0xff]  }
 0x2ae   : > { %v885_v24 = vmul.f32 0.70710677, %v878_v20  ;;  %v883_v13 = vmul.f32 0.5, %v878_v20  ;;  %v1721_v23 = vld [vmem:[#allocation11 + $0x8] sm:$0xff]   ;;  %v1441_v18 = vld [vmem:[%s2380_s6] ss:$0 sm:$0xff] }
 0x2af   : > { %v1439_v25 = vclamps-f32 %v884_v22, 3.832507  ;;  %v1982_v22 = vmov 0.0  }
 0x2b0   : > { %v1440_v26 = vclamps-f32 %v885_v24, 3.832507  ;;  %1502 = vmatprep.subr.bf16.mxu0 %v1982_v22 }
 0x2b1   : > { %v890_v27 = vmul.f32 %v1439_v25, %v1439_v25 }
 0x2b2   : > { %v891_v28 = vmul.f32 %v1440_v26, %v1440_v26 }
 0x2b3   : > { %v908_v29 = vmul.f32 -1.1791603e-07, %v890_v27  ;;  %v892_v30 = vmul.f32 0.00022905065, %v890_v27 }
 0x2b4   : > { %v909_v31 = vmul.f32 -1.1791603e-07, %v891_v28  ;;  %v893_v52 = vmul.f32 0.00022905065, %v891_v28 }
 0x2b5   : > { %v910_v32 = vadd.f32 2.3547966e-05, %v908_v29  ;;  %v894_v54 = vadd.f32 0.003408291, %v892_v30  ;;  %v1722_v30 = vld [vmem:[#allocation11 + $0x10] sm:$0xff]  }
 0x2b6   : > { %v911_v33 = vadd.f32 2.3547966e-05, %v909_v31  ;;  %v895_v36 = vadd.f32 0.003408291, %v893_v52  ;;  %v1723_v31 = vld [vmem:[#allocation11 + $0x18] sm:$0xff]   ;;  %v1725_v52 = vld [vmem:[#allocation11 + $0x28] sm:$0xff]  }
 0x2b7   : > { %v912_v51 = vmul.f32 %v910_v32, %v890_v27  ;;  %v896_v39 = vmul.f32 %v894_v54, %v890_v27  ;;  %v1724_v32 = vld [vmem:[#allocation11 + $0x20] sm:$0xff]  }
 0x2b8   : > { %v913_v34 = vmul.f32 %v911_v33, %v891_v28  ;;  %v897_v42 = vmul.f32 %v895_v36, %v891_v28  ;;  %v1726_v33 = vld [vmem:[#allocation11 + $0x30] sm:$0xff]  }
 0x2b9   : > { %v914_v35 = vadd.f32 0.0010179626, %v912_v51  ;;  %v898_v45 = vadd.f32 0.050955694, %v896_v39  ;;  %v1727_v51 = vld [vmem:[#allocation11 + $0x38] sm:$0xff]  }
 0x2ba   : > { %v915_v37 = vadd.f32 0.0010179626, %v913_v34  ;;  %v899_v48 = vadd.f32 0.050955694, %v897_v42  ;;  %v1458_v39 = vld [vmem:[%s2415_s25] ss:$0 sm:$0xff] }
 0x2bb   : > { %v916_v38 = vmul.f32 %v914_v35, %v890_v27  ;;  %v900_v53 = vmul.f32 %v898_v45, %v890_v27 }
 0x2bc   : > { %v917_v40 = vmul.f32 %v915_v37, %v891_v28  ;;  %v901_v57 = vmul.f32 %v899_v48, %v891_v28 }
 0x2bd   : > { %v918_v41 = vadd.f32 0.01407047, %v916_v38  ;;  %v902_v62 = vadd.f32 0.18520832, %v900_v53 }
 0x2be   : > { %v919_v43 = vadd.f32 0.01407047, %v917_v40  ;;  %v903_v3 = vadd.f32 0.18520832, %v901_v57 }
 0x2bf   : > { %v920_v44 = vmul.f32 %v918_v41, %v890_v27  ;;  %v904_v4 = vmul.f32 %v902_v62, %v890_v27 }
 0x2c0   : > { %v921_v46 = vmul.f32 %v919_v43, %v891_v28  ;;  %v905_v2 = vmul.f32 %v903_v3, %v891_v28 }
 0x2c1   : > { %v922_v47 = vadd.f32 0.11098505, %v920_v44  ;;  %v906_v5 = vadd.f32 1.1283791, %v904_v4 }
 0x2c2   : > { %v923_v49 = vadd.f32 0.11098505, %v921_v46  ;;  %v907_v58 = vadd.f32 1.1283791, %v905_v2 }
 0x2c3   : > { %v924_v50 = vmul.f32 %v922_v47, %v890_v27  ;;  %v932_v60 = vmul.f32 %v1439_v25, %v906_v5 }
 0x2c4   : > { %v925_v55 = vmul.f32 %v923_v49, %v891_v28  ;;  %v933_v7 = vmul.f32 %v1440_v26, %v907_v58 }
 0x2c5   : > { %v926_v56 = vadd.f32 0.49746925, %v924_v50 }
 0x2c6   : > { %v927_v59 = vadd.f32 0.49746925, %v925_v55 }
 0x2c7   : > { %v928_v61 = vmul.f32 %v926_v56, %v890_v27 }
 0x2c8   : > { %v929_v63 = vmul.f32 %v927_v59, %v891_v28 }
 0x2c9   : > { %v930_v0 = vadd.f32 1.0, %v928_v61 }
 0x2ca   : > { %v931_v1 = vadd.f32 1.0, %v929_v63 }
 0x2cb   : > { %1732 = vrcp.f32 %v930_v0 }
 0x2cc   : > { %1734 = vrcp.f32 %v931_v1 }
 0x2d5   : > { %v1733_v6 = vpop.eup %1732 }
 0x2d6   : > { %v1735_v8 = vpop.eup %1734  ;;  %v936_v9 = vmul.f32 %v1733_v6, %v932_v60 }
 0x2d7   : > { %v937_v10 = vmul.f32 %v1735_v8, %v933_v7 }
 0x2d8   : > { %v938_v12 = vadd.f32 1.0, %v936_v9 }
 0x2d9   : > { %v939_v14 = vadd.f32 1.0, %v937_v10 }
 0x2da   : > { %v940_v15 = vmul.f32 %v938_v12, %v882_v11 }
 0x2db   : > { %v941_v16 = vmul.f32 %v939_v14, %v883_v13 }
 0x2dc   : > { %v942_v19 = vpack.c.bf16 %v940_v15, %v940_v15 }
 0x2dd   : > { %v943_v17 = vpack.c.bf16 %v941_v16, %v941_v16 }
 0x2df   : > { %1111 = vmatprep.mubr.bf16.mxu0 %v943_v17 }
 0x2e0   : > { %1112 = vmatmul.mubr.bf16.vlgmr.msra.gmra.mrb[4].mxu0 %v942_v19 }
 0x2e1   : > { %1503 = vmatpush3.bf16.msra.mxu0 %v1720_v21  ;;  %1518 = vmatprep.mubr.msk.bf16.mxu0 %vm1983_vm0, %v1982_v22 }
 0x2e2   : > { %1504 = vmatprep.subr.bf16.mxu0 %v1982_v22 }
 0x2e5   : > { %1505 = vmatpush3.bf16.msra.mxu0 %v1721_v23 }
 0x2e6   : > { %1506 = vmatprep.subr.bf16.mxu0 %v1982_v22 }
 0x2e9   : > { %1507 = vmatpush3.bf16.msra.mxu0 %v1722_v30 }
 0x2ea   : > { %1508 = vmatprep.subr.bf16.mxu0 %v1982_v22 }
 0x2ed   : > { %1509 = vmatpush3.bf16.msra.mxu0 %v1723_v31 }
 0x2ee   : > { %1510 = vmatprep.subr.bf16.mxu0 %v1982_v22 }
 0x2f1   : > { %1511 = vmatpush3.bf16.msra.mxu0 %v1724_v32 }
 0x2f2   : > { %1512 = vmatprep.subr.bf16.mxu0 %v1982_v22 }
 0x2f5   : > { %1513 = vmatpush3.bf16.msra.mxu0 %v1725_v52 }
 0x2f6   : > { %1514 = vmatprep.subr.bf16.mxu0 %v1982_v22 }
 0x2f9   : > { %1515 = vmatpush3.bf16.msra.mxu0 %v1726_v33 }
 0x2fa   : > { %1516 = vmatprep.subr.bf16.mxu0 %v1982_v22 }
 0x2fd   : > { %1517 = vmatpush3.bf16.msra.mxu0 %v1727_v51 }
 0x3b3   : > { %v1487_v24 = vpop.f32.mrb[4].mxu0 }
 0x3b4   : > { %v1488_v25 = vpop.f32.mrb[5].mxu0 }
 0x3b5   : > { %v1489_v20 = vadd.f32 %v1488_v25, %v1487_v24  ;;  %v1490_v26 = vpop.f32.mrb[6].mxu0 }
 0x3b6   : > { %v1491_v27 = vpop.f32.mrb[7].mxu0 }
 0x3b7   : > { %v1114_v28 = vadd.f32 %v1489_v20, %v1441_v18 }
 0x3b9   : > { %v1119_v29 = vmul.f32 %v1114_v28, %v1114_v28 }
 0x3bb   : > { %1120 = vadd.xlane.f32.xlu0 %v1119_v29 }
 0x448   : > { %v1121_v54 = vpop.xlane.xlu0 %1120 }
 0x449   : > { %v1122_v34 = vmax.f32 %v1121_v54, 1e-24 }
 0x44b   : > { %1736 = vrsqrt.f32 %v1122_v34 }
 0x455   : > { %v1737_v35 = vpop.eup %1736 }
 0x456   : > { %v1124_v36 = vmul.f32 %v1737_v35, %v1114_v28 }
 0x458   : > { %v1125_v37 = vpack.c.bf16 %v1124_v36, %v1124_v36 }
 0x45a   : > { %1126 = vst [vmem:[#allocation2] sm:$0xf] %v1125_v37 }
 0x461   : > { %v1127_v38 = vld [vmem:[#allocation2] sm:$0xf] }
 0x462   : > { %1519 = vmatmul.mubr.bf16.vlgmr.msra.gmra.mrb[8].mxu0 %v1127_v38 }
 0x535   : > { %v1233_v40 = vpop.f32.mrb[8].mxu0 }
 0x536   : > { %v1234_v41 = vadd.f32 %v1458_v39, %v1233_v40  ;;  %v1520_v42 = vpop.f32.mrb[9].mxu0 }
 0x537   : > { %v1236_v43 = vpop.f32.mrb[10].mxu0 }
 0x538   : > { %1239 = vst [vmem:[%s419_s23] sm:$0xff] %v1234_v41  ;;  %v1521_v44 = vpop.f32.mrb[11].mxu0 }
 0x539   : > { %1893 = shalt.err (!%p1890_p8)
}
 0x53a   : > { %s1894_s3 = scalar_lea.hbm %s2325_s29, 128  ;;  %s1898_s25 = scalar_lea.hbm %s2416_s17, 256 }
 0x53b   : > { %p1895_p1 = scmp.ne.s32.totalorder %s2325_s29, %s1894_s3  ;;  %p1899_p13 = scmp.lt.u32.totalorder %s2325_s29, %s2416_s17 }
 0x53c   : > { %p1900_p12 = scmp.lt.u32.totalorder %s1898_s25, %s1894_s3  ;;  %p1902_p2 = scmp.lt.u32.totalorder %s1894_s3, %s2325_s29 }
 0x53d   : > { %p1896_p3 = pnand %p1895_p1, %p2417_p9 }
 0x53e   : > { %p1901_p4 = por %p1900_p12, %p1899_p13 }
 0x53f   : > { %p1897_p6 = pneg %p1896_p3 }
 0x540   : > { %p1903_p10 = por %p1902_p2, %p1901_p4 }
 0x542   : > { %p1904_p11 = pnand %p1903_p10, %p1897_p6 }
 0x544   : > { %1907 = shalt.err (!%p1904_p11)
}
 0x545   : > { %1540 = dma.vmem_to_hbm [thread:$0]  (%p2417_p9), %s2327_s15, 128, %s2325_s29, %s1241_s24  }
 0x546 PF: > { %s1267_s1 = sand.u32 1, %s1950_s30   ;;  %p2418_p0 = scmp.ne.s32.totalorder %s2411_s9, 0 }
 0x547   : > { %p2419_p7 = scmp.ge.s32.totalorder %s1970_s14, 2  ;;  %s1268_s16 = scalar_lea.sflag [#allocation5], %s1267_s1 }
 0x549   : > { %p1560_p5 = pnand %p2419_p7, %p2418_p0 }
 0x54b   : > { %1945 = dma.done.wait (!%p1560_p5), %s1268_s16, 128  }
 0x54c   : > { %1947 = vsyncadd (!%p1560_p5), %s1268_s16, 4294967168  ;;  %s27_s14 = sadd.s32 1, %s1970_s14   ;;  %s2420_s30 = smov %s1954_s10 }
 0x54d   : > { %p24_p8 = scmp.ge.s32.totalorder %s27_s14, 4   ;;  %s2421_s10 = smov %s1958_s11 }
 0x54e   : > { %s2422_s11 = smov %s2227_s19  ;;  %s2423_s12 = smov %s1966_s13 }
 0x54f   : > { %s2424_s13 = smov %s2426_s28  ;;  %26 = sbr.rel (!%p24_p8) target bundleno = 13 (0xd), region = 121 }
 0x556   :  { %1273 = vsyncpa [#allocation4], 1 }
 0x557   :  { %1275 = vsyncpa [#allocation4 + $0x1], 1 }
 0x558   :  { %1276 = vsyncpa [#allocation7], 1 }
 0x559   :  { %1277 = vsyncpa [#allocation10], 1 }
 0x55a   :  { %1278 = vsyncpa [#allocation5], 1 }
 0x55b   :  { %1280 = vsyncpa [#allocation5 + $0x1], 1 }

</bundles_post_ra>
